<compile_context>
chip_gen: v6e
topology: v6e:2x2x1
jax: 0.10.0
libtpu: 0.0.40
codegen_flags: <defaults>
</compile_context>

<pallas_src>
import math
import numpy as np
import jax
import jax.numpy as jnp
from jax.experimental import pallas as pl
from jax.experimental.pallas import tpu as pltpu  # noqa: F401  (kept for completeness)

# ---------------- tiny BERT config (synthetic, deterministic) ----------------
VOCAB = 100
TYPE_VOCAB = 2
MAX_POS = 16
HIDDEN = 32
N_HEADS = 2
HEAD_DIM = HIDDEN // N_HEADS
N_LAYERS = 2
INTERMEDIATE = 64
NUM_LABELS = 4
FEAT_SHRINK = 16          # feat_shrink != hidden -> feature_reducer is active
LN_EPS = 1e-12
HEAD_SLAB = 128           # lane-dense packed head output: [features | logits | zero pad]


# ---------------- helpers usable inside kernels ----------------
def _gelu(x):
    # TODO(synk): PyTorch nn.GELU default is exact erf-GELU; tanh approximation used in-kernel.
    return 0.5 * x * (1.0 + jnp.tanh(0.7978845608028654 * (x + 0.044715 * x * x * x)))


def _ln(x, g, b, eps=LN_EPS):
    mu = jnp.mean(x, axis=-1, keepdims=True)
    var = jnp.mean(jnp.square(x - mu), axis=-1, keepdims=True)
    return (x - mu) * jax.lax.rsqrt(var + eps) * g + b


# -------- fused kernel: embedding lookup + emb-LN + N encoder layers + head --------
def fused_bert_kernel(ids_ref, type_ref, pos_ref, mask_ref,
                      wemb_ref, pemb_ref, temb_ref, emb_g_ref, emb_b_ref,
                      wq_ref, bq_ref, wk_ref, bk_ref, wv_ref, bv_ref,
                      wo_ref, bo_ref, ln1g_ref, ln1b_ref,
                      w1_ref, b1_ref, w2_ref, b2_ref, ln2g_ref, ln2b_ref,
                      wred_ref, bred_ref, wcls_ref, bcls_ref,
                      head_ref):
    B, _, S = mask_ref.shape
    R = ids_ref.shape[0]                 # B * S rows, sublane-aligned (multiple of 8)
    H = wemb_ref.shape[1]
    n_layers = wq_ref.shape[0]
    scale = 1.0 / math.sqrt(HEAD_DIM)

    # ---- fused embedding gather: one-hot @ table on the MXU (no XLA-side gather) ----
    # TODO(synk): exact torch embedding gather replaced by a one-hot matmul; MXU rounding may
    # introduce bf16-level error on the (synthetic, f32) embedding values.
    def lookup(id_ref, table_ref):
        vocab = table_ref.shape[0]
        oh = (id_ref[...] ==
              jax.lax.broadcasted_iota(jnp.int32, (R, vocab), 1)).astype(jnp.float32)
        return jnp.dot(oh, table_ref[...], preferred_element_type=jnp.float32)

    e = (lookup(ids_ref, wemb_ref)
         + lookup(pos_ref, pemb_ref)
         + lookup(type_ref, temb_ref))
    x = _ln(e, emb_g_ref[...], emb_b_ref[...])            # (R, H) f32, lives in values/VMEM

    # ---- loop-invariant values hoisted out of the (unrolled) layer loop ----
    add_mask = mask_ref[...]                               # (B, 1, S) additive attention mask
    lane = jax.lax.broadcasted_iota(jnp.int32, (1, 1, H), 2)
    head_masks = [((lane >= h * HEAD_DIM) & (lane < (h + 1) * HEAD_DIM)).astype(jnp.float32)
                  for h in range(N_HEADS)]

    # ---- N transformer encoder layers, unrolled in-kernel (no grid steps) ----
    for l in range(n_layers):
        xb = x.astype(jnp.bfloat16)
        q = jnp.dot(xb, wq_ref[l], preferred_element_type=jnp.float32) + bq_ref[l]
        k = jnp.dot(xb, wk_ref[l], preferred_element_type=jnp.float32) + bk_ref[l]
        v = jnp.dot(xb, wv_ref[l], preferred_element_type=jnp.float32) + bv_ref[l]
        q3 = (q * scale).reshape(B, S, H)                  # fold 1/sqrt(d) once into q
        k3 = k.reshape(B, S, H).astype(jnp.bfloat16)
        v3 = v.reshape(B, S, H)

        # Multi-head attention with full-width (H-lane) operands: head selection via lane
        # masks instead of 16-lane slices / concatenation (no XLU relayouts per layer).
        ctx3 = jnp.zeros((B, S, H), jnp.float32)
        for hm in head_masks:
            qh = (q3 * hm).astype(jnp.bfloat16)
            s = jnp.einsum('bqd,bkd->bqk', qh, k3,
                           preferred_element_type=jnp.float32) + add_mask
            s_max = jnp.max(s, axis=-1, keepdims=True)
            p = jnp.exp(s - s_max)
            p = p * pl.reciprocal(jnp.sum(p, axis=-1, keepdims=True), approx=True)
            vh = (v3 * hm).astype(jnp.bfloat16)            # zeros outside this head's lanes
            ctx3 = ctx3 + jnp.einsum('bqk,bkd->bqd', p.astype(jnp.bfloat16), vh,
                                     preferred_element_type=jnp.float32)
        ctx = ctx3.reshape(R, H)

        attn = jnp.dot(ctx.astype(jnp.bfloat16), wo_ref[l],
                       preferred_element_type=jnp.float32) + bo_ref[l]
        h1 = _ln(x + attn, ln1g_ref[l], ln1b_ref[l])

        ff = _gelu(jnp.dot(h1.astype(jnp.bfloat16), w1_ref[l],
                           preferred_element_type=jnp.float32) + b1_ref[l])
        ff = jnp.dot(ff.astype(jnp.bfloat16), w2_ref[l],
                     preferred_element_type=jnp.float32) + b2_ref[l]
        x = _ln(h1 + ff, ln2g_ref[l], ln2b_ref[l])

    # ---- classification head (feature_reducer Linear+GELU -> classifier Linear) ----
    # Computed on ALL R rows (rows stay (8,*)-sublane aligned, matmuls still < 1 MXU tile);
    # the CLS rows (use_pooler=False -> token 0) are selected by a free host-side slice.
    feat = _gelu(jnp.dot(x.astype(jnp.bfloat16), wred_ref[...],
                         preferred_element_type=jnp.float32) + bred_ref[...])
    logits = jnp.dot(feat.astype(jnp.bfloat16), wcls_ref[...],
                     preferred_element_type=jnp.float32) + bcls_ref[...]
    pad = jnp.zeros((R, HEAD_SLAB - FEAT_SHRINK - NUM_LABELS), jnp.float32)
    head_ref[...] = jnp.concatenate([feat, logits, pad], axis=-1)   # full-tile (8,128) stores


# ---------------- deterministic parameter init ----------------
def _xavier_uniform(key, shape):
    fan_in, fan_out = shape
    limit = math.sqrt(6.0 / (fan_in + fan_out))
    return jax.random.uniform(key, shape, jnp.float32, -limit, limit)


def init_params(key):
    keys = iter(jax.random.split(key, 128))
    nk = lambda: next(keys)

    def dense_bf16(shape):
        return (0.02 * jax.random.normal(nk(), shape, jnp.float32)).astype(jnp.bfloat16)

    def stack_dense(shape):
        return jnp.stack([dense_bf16(shape) for _ in range(N_LAYERS)])

    params = {
        'word_emb': 0.02 * jax.random.normal(nk(), (VOCAB, HIDDEN), jnp.float32),
        'pos_emb':  0.02 * jax.random.normal(nk(), (MAX_POS, HIDDEN), jnp.float32),
        'type_emb': 0.02 * jax.random.normal(nk(), (TYPE_VOCAB, HIDDEN), jnp.float32),
        'emb_lng': jnp.ones((1, HIDDEN), jnp.float32),
        'emb_lnb': jnp.zeros((1, HIDDEN), jnp.float32),
        # classifier head (_init_weights: xavier_uniform weights, zero bias)
        'w_red': _xavier_uniform(nk(), (HIDDEN, FEAT_SHRINK)).astype(jnp.bfloat16),
        'b_red': jnp.zeros((1, FEAT_SHRINK), jnp.float32),
        'w_cls': _xavier_uniform(nk(), (FEAT_SHRINK, NUM_LABELS)).astype(jnp.bfloat16),
        'b_cls': jnp.zeros((1, NUM_LABELS), jnp.float32),
        # stacked per-layer weights (bf16 for MXU), biases / LN params in f32
        'wq': stack_dense((HIDDEN, HIDDEN)),
        'wk': stack_dense((HIDDEN, HIDDEN)),
        'wv': stack_dense((HIDDEN, HIDDEN)),
        'wo': stack_dense((HIDDEN, HIDDEN)),
        'w1': stack_dense((HIDDEN, INTERMEDIATE)),
        'w2': stack_dense((INTERMEDIATE, HIDDEN)),
        'bq': jnp.zeros((N_LAYERS, 1, HIDDEN), jnp.float32),
        'bk': jnp.zeros((N_LAYERS, 1, HIDDEN), jnp.float32),
        'bv': jnp.zeros((N_LAYERS, 1, HIDDEN), jnp.float32),
        'bo': jnp.zeros((N_LAYERS, 1, HIDDEN), jnp.float32),
        'b1': jnp.zeros((N_LAYERS, 1, INTERMEDIATE), jnp.float32),
        'b2': jnp.zeros((N_LAYERS, 1, HIDDEN), jnp.float32),
        'ln1g': jnp.ones((N_LAYERS, 1, HIDDEN), jnp.float32),
        'ln1b': jnp.zeros((N_LAYERS, 1, HIDDEN), jnp.float32),
        'ln2g': jnp.ones((N_LAYERS, 1, HIDDEN), jnp.float32),
        'ln2b': jnp.zeros((N_LAYERS, 1, HIDDEN), jnp.float32),
    }
    return params


# ---------------- forward (BertClassifier with return_features=True) ----------------
@jax.jit
def bert_classifier_forward(params, input_ids, attention_mask, token_type_ids):
    B, S = input_ids.shape
    R = B * S
    # Token / type / position ids as (R, 1) int32 columns for the in-kernel one-hot lookup.
    ids2 = input_ids.reshape(R, 1).astype(jnp.int32)
    type2 = token_type_ids.reshape(R, 1).astype(jnp.int32)
    pos2 = jnp.tile(jnp.arange(S, dtype=jnp.int32), B).reshape(R, 1)
    add_mask = ((1.0 - attention_mask.astype(jnp.float32)) * -1e9).reshape(B, 1, S)

    # Single pallas_call, no grid: every (tiny) weight / table is a whole-array VMEM input,
    # activations stay resident across the unrolled in-kernel layer loop.
    head = pl.pallas_call(
        fused_bert_kernel,
        out_shape=jax.ShapeDtypeStruct((R, HEAD_SLAB), jnp.float32),
    )(ids2, type2, pos2, add_mask,
      params['word_emb'], params['pos_emb'], params['type_emb'],
      params['emb_lng'], params['emb_lnb'],
      params['wq'], params['bq'], params['wk'], params['bk'],
      params['wv'], params['bv'], params['wo'], params['bo'],
      params['ln1g'], params['ln1b'], params['w1'], params['b1'],
      params['w2'], params['b2'], params['ln2g'], params['ln2b'],
      params['w_red'], params['b_red'], params['w_cls'], params['b_cls'])

    # use_pooler=False -> last_hidden_state[:, 0, :]; CLS rows selected by a free view slice.
    head3 = head.reshape(B, S, HEAD_SLAB)
    features = head3[:, 0, :FEAT_SHRINK]
    logits = head3[:, 0, FEAT_SHRINK:FEAT_SHRINK + NUM_LABELS]
    return logits, features


class BertClassificationInference:
    """Mirrors BertClassificationInferenceModel: runs the classifier with no grad and
    writes fp16 logits / features into preallocated (memmap-like) numpy storage."""

    def __init__(self, params, n_total):
        self.params = params
        self.prediction_storage = np.zeros((n_total, NUM_LABELS), np.float16)
        self.embedding_storage = np.zeros((n_total, FEAT_SHRINK), np.float16)
        self.sample_count = 0

    def __call__(self, input_ids, attention_mask, token_type_ids=None):
        if token_type_ids is None:
            token_type_ids = jnp.zeros_like(input_ids)
        logits, features = bert_classifier_forward(
            self.params, input_ids, attention_mask, token_type_ids)
        b = int(input_ids.shape[0])
        end = self.sample_count + b
        self.prediction_storage[self.sample_count:end] = np.asarray(logits, np.float16)
        self.embedding_storage[self.sample_count:end] = np.asarray(features, np.float16)
        self.sample_count = end
        return logits


if __name__ == "__main__":
    key = jax.random.PRNGKey(0)
    pkey, ikey = jax.random.split(key)
    params = init_params(pkey)

    B, S = 2, 8
    input_ids = jax.random.randint(ikey, (B, S), 0, VOCAB)
    attention_mask = jnp.array([[1] * S, [1] * 6 + [0] * 2], dtype=jnp.int32)

    model = BertClassificationInference(params, n_total=B)
    logits = model(input_ids, attention_mask)
    jax.block_until_ready(logits)

    assert logits.shape == (B, NUM_LABELS) and logits.dtype == jnp.float32
    assert bool(jnp.all(jnp.isfinite(logits)))
    assert model.sample_count == B
    assert model.prediction_storage.shape == (B, NUM_LABELS)
    assert model.embedding_storage.shape == (B, FEAT_SHRINK)
    print("KERNEL_OK")
</pallas_src>

<mosaic_0001>
module attributes {stable_mosaic.version = 11 : i64} {
  func.func @fused_bert_kernel(%arg0: memref<16x1xi32, #tpu.memory_space<vmem>>, %arg1: memref<16x1xi32, #tpu.memory_space<vmem>>, %arg2: memref<16x1xi32, #tpu.memory_space<vmem>>, %arg3: memref<2x1x8xf32, #tpu.memory_space<vmem>>, %arg4: memref<100x32xf32, #tpu.memory_space<vmem>>, %arg5: memref<16x32xf32, #tpu.memory_space<vmem>>, %arg6: memref<2x32xf32, #tpu.memory_space<vmem>>, %arg7: memref<1x32xf32, #tpu.memory_space<vmem>>, %arg8: memref<1x32xf32, #tpu.memory_space<vmem>>, %arg9: memref<2x32x32xbf16, #tpu.memory_space<vmem>>, %arg10: memref<2x1x32xf32, #tpu.memory_space<vmem>>, %arg11: memref<2x32x32xbf16, #tpu.memory_space<vmem>>, %arg12: memref<2x1x32xf32, #tpu.memory_space<vmem>>, %arg13: memref<2x32x32xbf16, #tpu.memory_space<vmem>>, %arg14: memref<2x1x32xf32, #tpu.memory_space<vmem>>, %arg15: memref<2x32x32xbf16, #tpu.memory_space<vmem>>, %arg16: memref<2x1x32xf32, #tpu.memory_space<vmem>>, %arg17: memref<2x1x32xf32, #tpu.memory_space<vmem>>, %arg18: memref<2x1x32xf32, #tpu.memory_space<vmem>>, %arg19: memref<2x32x64xbf16, #tpu.memory_space<vmem>>, %arg20: memref<2x1x64xf32, #tpu.memory_space<vmem>>, %arg21: memref<2x64x32xbf16, #tpu.memory_space<vmem>>, %arg22: memref<2x1x32xf32, #tpu.memory_space<vmem>>, %arg23: memref<2x1x32xf32, #tpu.memory_space<vmem>>, %arg24: memref<2x1x32xf32, #tpu.memory_space<vmem>>, %arg25: memref<32x16xbf16, #tpu.memory_space<vmem>>, %arg26: memref<1x16xf32, #tpu.memory_space<vmem>>, %arg27: memref<16x4xbf16, #tpu.memory_space<vmem>>, %arg28: memref<1x4xf32, #tpu.memory_space<vmem>>, %arg29: memref<16x128xf32, #tpu.memory_space<vmem>>) attributes {dimension_semantics = [], scalar_prefetch = 0 : i64, scratch_operands = 0 : i64, tpu.core_type = #tpu.core_type<tc>} {
    %c0 = arith.constant 0 : index
    %c0_0 = arith.constant 0 : index
    %0 = vector.load %arg0[%c0, %c0_0] : memref<16x1xi32, #tpu.memory_space<vmem>>, vector<16x1xi32>
    %1 = tpu.iota {dimensions = array<i32: 1>} : vector<16x100xi32>
    %2 = vector.broadcast %0 : vector<16x1xi32> to vector<16x100xi32>
    %3 = arith.cmpi eq, %2, %1 : vector<16x100xi32>
    %4 = arith.extui %3 : vector<16x100xi1> to vector<16x100xi32>
    %5 = arith.sitofp %4 : vector<16x100xi32> to vector<16x100xf32>
    %c0_1 = arith.constant 0 : index
    %c0_2 = arith.constant 0 : index
    %6 = vector.load %arg4[%c0_1, %c0_2] : memref<100x32xf32, #tpu.memory_space<vmem>>, vector<100x32xf32>
    %cst = arith.constant dense<0.000000e+00> : vector<16x32xf32>
    %7 = tpu.matmul %5, %6, %cst {dimension_numbers = #tpu.dot_dimension_numbers<[1], [0], [0], [1], [0, 0, 1, 1], [], []>} : vector<16x100xf32>, vector<100x32xf32>, vector<16x32xf32> -> vector<16x32xf32>
    %c0_3 = arith.constant 0 : index
    %c0_4 = arith.constant 0 : index
    %8 = vector.load %arg2[%c0_3, %c0_4] : memref<16x1xi32, #tpu.memory_space<vmem>>, vector<16x1xi32>
    %9 = tpu.iota {dimensions = array<i32: 1>} : vector<16x16xi32>
    %10 = vector.broadcast %8 : vector<16x1xi32> to vector<16x16xi32>
    %11 = arith.cmpi eq, %10, %9 : vector<16x16xi32>
    %12 = arith.extui %11 : vector<16x16xi1> to vector<16x16xi32>
    %13 = arith.sitofp %12 : vector<16x16xi32> to vector<16x16xf32>
    %c0_5 = arith.constant 0 : index
    %c0_6 = arith.constant 0 : index
    %14 = vector.load %arg5[%c0_5, %c0_6] : memref<16x32xf32, #tpu.memory_space<vmem>>, vector<16x32xf32>
    %cst_7 = arith.constant dense<0.000000e+00> : vector<16x32xf32>
    %15 = tpu.matmul %13, %14, %cst_7 {dimension_numbers = #tpu.dot_dimension_numbers<[1], [0], [0], [1], [0, 0, 1, 1], [], []>} : vector<16x16xf32>, vector<16x32xf32>, vector<16x32xf32> -> vector<16x32xf32>
    %16 = arith.addf %7, %15 : vector<16x32xf32>
    %c0_8 = arith.constant 0 : index
    %c0_9 = arith.constant 0 : index
    %17 = vector.load %arg1[%c0_8, %c0_9] : memref<16x1xi32, #tpu.memory_space<vmem>>, vector<16x1xi32>
    %18 = tpu.iota {dimensions = array<i32: 1>} : vector<16x2xi32>
    %19 = vector.broadcast %17 : vector<16x1xi32> to vector<16x2xi32>
    %20 = arith.cmpi eq, %19, %18 : vector<16x2xi32>
    %21 = arith.extui %20 : vector<16x2xi1> to vector<16x2xi32>
    %22 = arith.sitofp %21 : vector<16x2xi32> to vector<16x2xf32>
    %c0_10 = arith.constant 0 : index
    %c0_11 = arith.constant 0 : index
    %23 = vector.load %arg6[%c0_10, %c0_11] : memref<2x32xf32, #tpu.memory_space<vmem>>, vector<2x32xf32>
    %cst_12 = arith.constant dense<0.000000e+00> : vector<16x32xf32>
    %24 = tpu.matmul %22, %23, %cst_12 {dimension_numbers = #tpu.dot_dimension_numbers<[1], [0], [0], [1], [0, 0, 1, 1], [], []>} : vector<16x2xf32>, vector<2x32xf32>, vector<16x32xf32> -> vector<16x32xf32>
    %25 = arith.addf %16, %24 : vector<16x32xf32>
    %c0_13 = arith.constant 0 : index
    %c0_14 = arith.constant 0 : index
    %26 = vector.load %arg7[%c0_13, %c0_14] : memref<1x32xf32, #tpu.memory_space<vmem>>, vector<1x32xf32>
    %c0_15 = arith.constant 0 : index
    %c0_16 = arith.constant 0 : index
    %27 = vector.load %arg8[%c0_15, %c0_16] : memref<1x32xf32, #tpu.memory_space<vmem>>, vector<1x32xf32>
    %cst_17 = arith.constant dense<0.000000e+00> : vector<16xf32>
    %28 = vector.multi_reduction <add>, %25, %cst_17 [1] : vector<16x32xf32> to vector<16xf32>
    %29 = vector.shape_cast %28 : vector<16xf32> to vector<16x1xf32>
    %cst_18 = arith.constant 3.200000e+01 : f32
    %30 = vector.broadcast %cst_18 : f32 to vector<16x1xf32>
    %31 = arith.divf %29, %30 : vector<16x1xf32>
    %32 = vector.broadcast %31 : vector<16x1xf32> to vector<16x32xf32>
    %33 = arith.subf %25, %32 : vector<16x32xf32>
    %34 = arith.mulf %33, %33 : vector<16x32xf32>
    %cst_19 = arith.constant dense<0.000000e+00> : vector<16xf32>
    %35 = vector.multi_reduction <add>, %34, %cst_19 [1] : vector<16x32xf32> to vector<16xf32>
    %36 = vector.shape_cast %35 : vector<16xf32> to vector<16x1xf32>
    %cst_20 = arith.constant 3.200000e+01 : f32
    %37 = vector.broadcast %cst_20 : f32 to vector<16x1xf32>
    %38 = arith.divf %36, %37 : vector<16x1xf32>
    %39 = vector.broadcast %31 : vector<16x1xf32> to vector<16x32xf32>
    %40 = arith.subf %25, %39 : vector<16x32xf32>
    %cst_21 = arith.constant 9.99999996E-13 : f32
    %41 = vector.broadcast %cst_21 : f32 to vector<16x1xf32>
    %42 = arith.addf %38, %41 : vector<16x1xf32>
    %43 = math.rsqrt %42 : vector<16x1xf32>
    %44 = vector.broadcast %43 : vector<16x1xf32> to vector<16x32xf32>
    %45 = arith.mulf %40, %44 : vector<16x32xf32>
    %46 = vector.broadcast %26 : vector<1x32xf32> to vector<16x32xf32>
    %47 = arith.mulf %45, %46 : vector<16x32xf32>
    %48 = vector.broadcast %27 : vector<1x32xf32> to vector<16x32xf32>
    %49 = arith.addf %47, %48 : vector<16x32xf32>
    %c0_22 = arith.constant 0 : index
    %c0_23 = arith.constant 0 : index
    %c0_24 = arith.constant 0 : index
    %50 = vector.load %arg3[%c0_22, %c0_23, %c0_24] : memref<2x1x8xf32, #tpu.memory_space<vmem>>, vector<2x1x8xf32>
    %51 = tpu.iota {dimensions = array<i32: 2>} : vector<1x1x32xi32>
    %c0_i32 = arith.constant 0 : i32
    %52 = vector.broadcast %c0_i32 : i32 to vector<1x1x32xi32>
    %53 = arith.cmpi sge, %51, %52 : vector<1x1x32xi32>
    %c16_i32 = arith.constant 16 : i32
    %54 = vector.broadcast %c16_i32 : i32 to vector<1x1x32xi32>
    %55 = arith.cmpi slt, %51, %54 : vector<1x1x32xi32>
    %56 = arith.andi %53, %55 : vector<1x1x32xi1>
    %57 = arith.extui %56 : vector<1x1x32xi1> to vector<1x1x32xi32>
    %58 = arith.sitofp %57 : vector<1x1x32xi32> to vector<1x1x32xf32>
    %c16_i32_25 = arith.constant 16 : i32
    %59 = vector.broadcast %c16_i32_25 : i32 to vector<1x1x32xi32>
    %60 = arith.cmpi sge, %51, %59 : vector<1x1x32xi32>
    %c32_i32 = arith.constant 32 : i32
    %61 = vector.broadcast %c32_i32 : i32 to vector<1x1x32xi32>
    %62 = arith.cmpi slt, %51, %61 : vector<1x1x32xi32>
    %63 = arith.andi %60, %62 : vector<1x1x32xi1>
    %64 = arith.extui %63 : vector<1x1x32xi1> to vector<1x1x32xi32>
    %65 = arith.sitofp %64 : vector<1x1x32xi32> to vector<1x1x32xf32>
    %66 = arith.truncf %49 : vector<16x32xf32> to vector<16x32xbf16>
    %c0_26 = arith.constant 0 : index
    %c0_27 = arith.constant 0 : index
    %c0_28 = arith.constant 0 : index
    %67 = vector.load %arg9[%c0_26, %c0_27, %c0_28] : memref<2x32x32xbf16, #tpu.memory_space<vmem>>, vector<1x32x32xbf16>
    %68 = vector.shape_cast %67 : vector<1x32x32xbf16> to vector<32x32xbf16>
    %cst_29 = arith.constant dense<0.000000e+00> : vector<16x32xf32>
    %69 = tpu.matmul %66, %68, %cst_29 {dimension_numbers = #tpu.dot_dimension_numbers<[1], [0], [0], [1], [0, 0, 1, 1], [], []>} : vector<16x32xbf16>, vector<32x32xbf16>, vector<16x32xf32> -> vector<16x32xf32>
    %c0_30 = arith.constant 0 : index
    %c0_31 = arith.constant 0 : index
    %c0_32 = arith.constant 0 : index
    %70 = vector.load %arg10[%c0_30, %c0_31, %c0_32] : memref<2x1x32xf32, #tpu.memory_space<vmem>>, vector<1x1x32xf32>
    %71 = vector.shape_cast %70 : vector<1x1x32xf32> to vector<1x32xf32>
    %72 = vector.broadcast %71 : vector<1x32xf32> to vector<16x32xf32>
    %73 = arith.addf %69, %72 : vector<16x32xf32>
    %c0_33 = arith.constant 0 : index
    %c0_34 = arith.constant 0 : index
    %c0_35 = arith.constant 0 : index
    %74 = vector.load %arg11[%c0_33, %c0_34, %c0_35] : memref<2x32x32xbf16, #tpu.memory_space<vmem>>, vector<1x32x32xbf16>
    %75 = vector.shape_cast %74 : vector<1x32x32xbf16> to vector<32x32xbf16>
    %cst_36 = arith.constant dense<0.000000e+00> : vector<16x32xf32>
    %76 = tpu.matmul %66, %75, %cst_36 {dimension_numbers = #tpu.dot_dimension_numbers<[1], [0], [0], [1], [0, 0, 1, 1], [], []>} : vector<16x32xbf16>, vector<32x32xbf16>, vector<16x32xf32> -> vector<16x32xf32>
    %c0_37 = arith.constant 0 : index
    %c0_38 = arith.constant 0 : index
    %c0_39 = arith.constant 0 : index
    %77 = vector.load %arg12[%c0_37, %c0_38, %c0_39] : memref<2x1x32xf32, #tpu.memory_space<vmem>>, vector<1x1x32xf32>
    %78 = vector.shape_cast %77 : vector<1x1x32xf32> to vector<1x32xf32>
    %79 = vector.broadcast %78 : vector<1x32xf32> to vector<16x32xf32>
    %80 = arith.addf %76, %79 : vector<16x32xf32>
    %c0_40 = arith.constant 0 : index
    %c0_41 = arith.constant 0 : index
    %c0_42 = arith.constant 0 : index
    %81 = vector.load %arg13[%c0_40, %c0_41, %c0_42] : memref<2x32x32xbf16, #tpu.memory_space<vmem>>, vector<1x32x32xbf16>
    %82 = vector.shape_cast %81 : vector<1x32x32xbf16> to vector<32x32xbf16>
    %cst_43 = arith.constant dense<0.000000e+00> : vector<16x32xf32>
    %83 = tpu.matmul %66, %82, %cst_43 {dimension_numbers = #tpu.dot_dimension_numbers<[1], [0], [0], [1], [0, 0, 1, 1], [], []>} : vector<16x32xbf16>, vector<32x32xbf16>, vector<16x32xf32> -> vector<16x32xf32>
    %c0_44 = arith.constant 0 : index
    %c0_45 = arith.constant 0 : index
    %c0_46 = arith.constant 0 : index
    %84 = vector.load %arg14[%c0_44, %c0_45, %c0_46] : memref<2x1x32xf32, #tpu.memory_space<vmem>>, vector<1x1x32xf32>
    %85 = vector.shape_cast %84 : vector<1x1x32xf32> to vector<1x32xf32>
    %86 = vector.broadcast %85 : vector<1x32xf32> to vector<16x32xf32>
    %87 = arith.addf %83, %86 : vector<16x32xf32>
    %cst_47 = arith.constant 2.500000e-01 : f32
    %88 = vector.broadcast %cst_47 : f32 to vector<16x32xf32>
    %89 = arith.mulf %73, %88 : vector<16x32xf32>
    %90 = vector.shape_cast %89 : vector<16x32xf32> to vector<2x8x32xf32>
    %91 = vector.shape_cast %80 : vector<16x32xf32> to vector<2x8x32xf32>
    %92 = arith.truncf %91 : vector<2x8x32xf32> to vector<2x8x32xbf16>
    %93 = vector.shape_cast %87 : vector<16x32xf32> to vector<2x8x32xf32>
    %cst_48 = arith.constant 0.000000e+00 : f32
    %94 = vector.broadcast %cst_48 : f32 to vector<2x8x32xf32>
    %95 = vector.broadcast %58 : vector<1x1x32xf32> to vector<2x8x32xf32>
    %96 = arith.mulf %90, %95 : vector<2x8x32xf32>
    %97 = arith.truncf %96 : vector<2x8x32xf32> to vector<2x8x32xbf16>
    "tpu.trace_start"() <{level = 10 : i32, message = "bqd,bkd->bqk"}> : () -> ()
    %cst_49 = arith.constant dense<0.000000e+00> : vector<2x8x8xf32>
    %98 = tpu.matmul %97, %92, %cst_49 {dimension_numbers = #tpu.dot_dimension_numbers<[2], [2], [1], [1], [0, 0, 0, 1, 1, 1], [0], [0]>} : vector<2x8x32xbf16>, vector<2x8x32xbf16>, vector<2x8x8xf32> -> vector<2x8x8xf32>
    "tpu.trace_stop"() : () -> ()
    %99 = vector.broadcast %50 : vector<2x1x8xf32> to vector<2x8x8xf32>
    %100 = arith.addf %98, %99 : vector<2x8x8xf32>
    %cst_50 = arith.constant dense<0xFF800000> : vector<2x8xf32>
    %101 = vector.multi_reduction <maximumf>, %100, %cst_50 [2] : vector<2x8x8xf32> to vector<2x8xf32>
    %102 = vector.shape_cast %101 : vector<2x8xf32> to vector<2x8x1xf32>
    %103 = vector.broadcast %102 : vector<2x8x1xf32> to vector<2x8x8xf32>
    %104 = arith.subf %100, %103 : vector<2x8x8xf32>
    %105 = math.exp %104 : vector<2x8x8xf32>
    %cst_51 = arith.constant dense<0.000000e+00> : vector<2x8xf32>
    %106 = vector.multi_reduction <add>, %105, %cst_51 [2] : vector<2x8x8xf32> to vector<2x8xf32>
    %107 = vector.shape_cast %106 : vector<2x8xf32> to vector<2x8x1xf32>
    %108 = tpu.reciprocal %107 {approx = true} : vector<2x8x1xf32> -> vector<2x8x1xf32>
    %109 = vector.broadcast %108 : vector<2x8x1xf32> to vector<2x8x8xf32>
    %110 = arith.mulf %105, %109 : vector<2x8x8xf32>
    %111 = vector.broadcast %58 : vector<1x1x32xf32> to vector<2x8x32xf32>
    %112 = arith.mulf %93, %111 : vector<2x8x32xf32>
    %113 = arith.truncf %112 : vector<2x8x32xf32> to vector<2x8x32xbf16>
    %114 = arith.truncf %110 : vector<2x8x8xf32> to vector<2x8x8xbf16>
    "tpu.trace_start"() <{level = 10 : i32, message = "bqk,bkd->bqd"}> : () -> ()
    %cst_52 = arith.constant dense<0.000000e+00> : vector<2x8x32xf32>
    %115 = tpu.matmul %114, %113, %cst_52 {dimension_numbers = #tpu.dot_dimension_numbers<[2], [1], [1], [2], [0, 0, 0, 1, 1, 2], [0], [0]>} : vector<2x8x8xbf16>, vector<2x8x32xbf16>, vector<2x8x32xf32> -> vector<2x8x32xf32>
    "tpu.trace_stop"() : () -> ()
    %116 = arith.addf %94, %115 : vector<2x8x32xf32>
    %117 = vector.broadcast %65 : vector<1x1x32xf32> to vector<2x8x32xf32>
    %118 = arith.mulf %90, %117 : vector<2x8x32xf32>
    %119 = arith.truncf %118 : vector<2x8x32xf32> to vector<2x8x32xbf16>
    "tpu.trace_start"() <{level = 10 : i32, message = "bqd,bkd->bqk"}> : () -> ()
    %cst_53 = arith.constant dense<0.000000e+00> : vector<2x8x8xf32>
    %120 = tpu.matmul %119, %92, %cst_53 {dimension_numbers = #tpu.dot_dimension_numbers<[2], [2], [1], [1], [0, 0, 0, 1, 1, 1], [0], [0]>} : vector<2x8x32xbf16>, vector<2x8x32xbf16>, vector<2x8x8xf32> -> vector<2x8x8xf32>
    "tpu.trace_stop"() : () -> ()
    %121 = vector.broadcast %50 : vector<2x1x8xf32> to vector<2x8x8xf32>
    %122 = arith.addf %120, %121 : vector<2x8x8xf32>
    %cst_54 = arith.constant dense<0xFF800000> : vector<2x8xf32>
    %123 = vector.multi_reduction <maximumf>, %122, %cst_54 [2] : vector<2x8x8xf32> to vector<2x8xf32>
    %124 = vector.shape_cast %123 : vector<2x8xf32> to vector<2x8x1xf32>
    %125 = vector.broadcast %124 : vector<2x8x1xf32> to vector<2x8x8xf32>
    %126 = arith.subf %122, %125 : vector<2x8x8xf32>
    %127 = math.exp %126 : vector<2x8x8xf32>
    %cst_55 = arith.constant dense<0.000000e+00> : vector<2x8xf32>
    %128 = vector.multi_reduction <add>, %127, %cst_55 [2] : vector<2x8x8xf32> to vector<2x8xf32>
    %129 = vector.shape_cast %128 : vector<2x8xf32> to vector<2x8x1xf32>
    %130 = tpu.reciprocal %129 {approx = true} : vector<2x8x1xf32> -> vector<2x8x1xf32>
    %131 = vector.broadcast %130 : vector<2x8x1xf32> to vector<2x8x8xf32>
    %132 = arith.mulf %127, %131 : vector<2x8x8xf32>
    %133 = vector.broadcast %65 : vector<1x1x32xf32> to vector<2x8x32xf32>
    %134 = arith.mulf %93, %133 : vector<2x8x32xf32>
    %135 = arith.truncf %134 : vector<2x8x32xf32> to vector<2x8x32xbf16>
    %136 = arith.truncf %132 : vector<2x8x8xf32> to vector<2x8x8xbf16>
    "tpu.trace_start"() <{level = 10 : i32, message = "bqk,bkd->bqd"}> : () -> ()
    %cst_56 = arith.constant dense<0.000000e+00> : vector<2x8x32xf32>
    %137 = tpu.matmul %136, %135, %cst_56 {dimension_numbers = #tpu.dot_dimension_numbers<[2], [1], [1], [2], [0, 0, 0, 1, 1, 2], [0], [0]>} : vector<2x8x8xbf16>, vector<2x8x32xbf16>, vector<2x8x32xf32> -> vector<2x8x32xf32>
    "tpu.trace_stop"() : () -> ()
    %138 = arith.addf %116, %137 : vector<2x8x32xf32>
    %139 = vector.shape_cast %138 : vector<2x8x32xf32> to vector<16x32xf32>
    %140 = arith.truncf %139 : vector<16x32xf32> to vector<16x32xbf16>
    %c0_57 = arith.constant 0 : index
    %c0_58 = arith.constant 0 : index
    %c0_59 = arith.constant 0 : index
    %141 = vector.load %arg15[%c0_57, %c0_58, %c0_59] : memref<2x32x32xbf16, #tpu.memory_space<vmem>>, vector<1x32x32xbf16>
    %142 = vector.shape_cast %141 : vector<1x32x32xbf16> to vector<32x32xbf16>
    %cst_60 = arith.constant dense<0.000000e+00> : vector<16x32xf32>
    %143 = tpu.matmul %140, %142, %cst_60 {dimension_numbers = #tpu.dot_dimension_numbers<[1], [0], [0], [1], [0, 0, 1, 1], [], []>} : vector<16x32xbf16>, vector<32x32xbf16>, vector<16x32xf32> -> vector<16x32xf32>
    %c0_61 = arith.constant 0 : index
    %c0_62 = arith.constant 0 : index
    %c0_63 = arith.constant 0 : index
    %144 = vector.load %arg16[%c0_61, %c0_62, %c0_63] : memref<2x1x32xf32, #tpu.memory_space<vmem>>, vector<1x1x32xf32>
    %145 = vector.shape_cast %144 : vector<1x1x32xf32> to vector<1x32xf32>
    %146 = vector.broadcast %145 : vector<1x32xf32> to vector<16x32xf32>
    %147 = arith.addf %143, %146 : vector<16x32xf32>
    %148 = arith.addf %49, %147 : vector<16x32xf32>
    %c0_64 = arith.constant 0 : index
    %c0_65 = arith.constant 0 : index
    %c0_66 = arith.constant 0 : index
    %149 = vector.load %arg17[%c0_64, %c0_65, %c0_66] : memref<2x1x32xf32, #tpu.memory_space<vmem>>, vector<1x1x32xf32>
    %150 = vector.shape_cast %149 : vector<1x1x32xf32> to vector<1x32xf32>
    %c0_67 = arith.constant 0 : index
    %c0_68 = arith.constant 0 : index
    %c0_69 = arith.constant 0 : index
    %151 = vector.load %arg18[%c0_67, %c0_68, %c0_69] : memref<2x1x32xf32, #tpu.memory_space<vmem>>, vector<1x1x32xf32>
    %152 = vector.shape_cast %151 : vector<1x1x32xf32> to vector<1x32xf32>
    %cst_70 = arith.constant dense<0.000000e+00> : vector<16xf32>
    %153 = vector.multi_reduction <add>, %148, %cst_70 [1] : vector<16x32xf32> to vector<16xf32>
    %154 = vector.shape_cast %153 : vector<16xf32> to vector<16x1xf32>
    %cst_71 = arith.constant 3.200000e+01 : f32
    %155 = vector.broadcast %cst_71 : f32 to vector<16x1xf32>
    %156 = arith.divf %154, %155 : vector<16x1xf32>
    %157 = vector.broadcast %156 : vector<16x1xf32> to vector<16x32xf32>
    %158 = arith.subf %148, %157 : vector<16x32xf32>
    %159 = arith.mulf %158, %158 : vector<16x32xf32>
    %cst_72 = arith.constant dense<0.000000e+00> : vector<16xf32>
    %160 = vector.multi_reduction <add>, %159, %cst_72 [1] : vector<16x32xf32> to vector<16xf32>
    %161 = vector.shape_cast %160 : vector<16xf32> to vector<16x1xf32>
    %cst_73 = arith.constant 3.200000e+01 : f32
    %162 = vector.broadcast %cst_73 : f32 to vector<16x1xf32>
    %163 = arith.divf %161, %162 : vector<16x1xf32>
    %164 = vector.broadcast %156 : vector<16x1xf32> to vector<16x32xf32>
    %165 = arith.subf %148, %164 : vector<16x32xf32>
    %cst_74 = arith.constant 9.99999996E-13 : f32
    %166 = vector.broadcast %cst_74 : f32 to vector<16x1xf32>
    %167 = arith.addf %163, %166 : vector<16x1xf32>
    %168 = math.rsqrt %167 : vector<16x1xf32>
    %169 = vector.broadcast %168 : vector<16x1xf32> to vector<16x32xf32>
    %170 = arith.mulf %165, %169 : vector<16x32xf32>
    %171 = vector.broadcast %150 : vector<1x32xf32> to vector<16x32xf32>
    %172 = arith.mulf %170, %171 : vector<16x32xf32>
    %173 = vector.broadcast %152 : vector<1x32xf32> to vector<16x32xf32>
    %174 = arith.addf %172, %173 : vector<16x32xf32>
    %175 = arith.truncf %174 : vector<16x32xf32> to vector<16x32xbf16>
    %c0_75 = arith.constant 0 : index
    %c0_76 = arith.constant 0 : index
    %c0_77 = arith.constant 0 : index
    %176 = vector.load %arg19[%c0_75, %c0_76, %c0_77] : memref<2x32x64xbf16, #tpu.memory_space<vmem>>, vector<1x32x64xbf16>
    %177 = vector.shape_cast %176 : vector<1x32x64xbf16> to vector<32x64xbf16>
    %cst_78 = arith.constant dense<0.000000e+00> : vector<16x64xf32>
    %178 = tpu.matmul %175, %177, %cst_78 {dimension_numbers = #tpu.dot_dimension_numbers<[1], [0], [0], [1], [0, 0, 1, 1], [], []>} : vector<16x32xbf16>, vector<32x64xbf16>, vector<16x64xf32> -> vector<16x64xf32>
    %c0_79 = arith.constant 0 : index
    %c0_80 = arith.constant 0 : index
    %c0_81 = arith.constant 0 : index
    %179 = vector.load %arg20[%c0_79, %c0_80, %c0_81] : memref<2x1x64xf32, #tpu.memory_space<vmem>>, vector<1x1x64xf32>
    %180 = vector.shape_cast %179 : vector<1x1x64xf32> to vector<1x64xf32>
    %181 = vector.broadcast %180 : vector<1x64xf32> to vector<16x64xf32>
    %182 = arith.addf %178, %181 : vector<16x64xf32>
    %cst_82 = arith.constant 5.000000e-01 : f32
    %183 = vector.broadcast %cst_82 : f32 to vector<16x64xf32>
    %184 = arith.mulf %183, %182 : vector<16x64xf32>
    %cst_83 = arith.constant 4.471500e-02 : f32
    %185 = vector.broadcast %cst_83 : f32 to vector<16x64xf32>
    %186 = arith.mulf %185, %182 : vector<16x64xf32>
    %187 = arith.mulf %186, %182 : vector<16x64xf32>
    %188 = arith.mulf %187, %182 : vector<16x64xf32>
    %189 = arith.addf %182, %188 : vector<16x64xf32>
    %cst_84 = arith.constant 0.797884583 : f32
    %190 = vector.broadcast %cst_84 : f32 to vector<16x64xf32>
    %191 = arith.mulf %190, %189 : vector<16x64xf32>
    %192 = math.tanh %191 : vector<16x64xf32>
    %cst_85 = arith.constant 1.000000e+00 : f32
    %193 = vector.broadcast %cst_85 : f32 to vector<16x64xf32>
    %194 = arith.addf %193, %192 : vector<16x64xf32>
    %195 = arith.mulf %184, %194 : vector<16x64xf32>
    %196 = arith.truncf %195 : vector<16x64xf32> to vector<16x64xbf16>
    %c0_86 = arith.constant 0 : index
    %c0_87 = arith.constant 0 : index
    %c0_88 = arith.constant 0 : index
    %197 = vector.load %arg21[%c0_86, %c0_87, %c0_88] : memref<2x64x32xbf16, #tpu.memory_space<vmem>>, vector<1x64x32xbf16>
    %198 = vector.shape_cast %197 : vector<1x64x32xbf16> to vector<64x32xbf16>
    %cst_89 = arith.constant dense<0.000000e+00> : vector<16x32xf32>
    %199 = tpu.matmul %196, %198, %cst_89 {dimension_numbers = #tpu.dot_dimension_numbers<[1], [0], [0], [1], [0, 0, 1, 1], [], []>} : vector<16x64xbf16>, vector<64x32xbf16>, vector<16x32xf32> -> vector<16x32xf32>
    %c0_90 = arith.constant 0 : index
    %c0_91 = arith.constant 0 : index
    %c0_92 = arith.constant 0 : index
    %200 = vector.load %arg22[%c0_90, %c0_91, %c0_92] : memref<2x1x32xf32, #tpu.memory_space<vmem>>, vector<1x1x32xf32>
    %201 = vector.shape_cast %200 : vector<1x1x32xf32> to vector<1x32xf32>
    %202 = vector.broadcast %201 : vector<1x32xf32> to vector<16x32xf32>
    %203 = arith.addf %199, %202 : vector<16x32xf32>
    %204 = arith.addf %174, %203 : vector<16x32xf32>
    %c0_93 = arith.constant 0 : index
    %c0_94 = arith.constant 0 : index
    %c0_95 = arith.constant 0 : index
    %205 = vector.load %arg23[%c0_93, %c0_94, %c0_95] : memref<2x1x32xf32, #tpu.memory_space<vmem>>, vector<1x1x32xf32>
    %206 = vector.shape_cast %205 : vector<1x1x32xf32> to vector<1x32xf32>
    %c0_96 = arith.constant 0 : index
    %c0_97 = arith.constant 0 : index
    %c0_98 = arith.constant 0 : index
    %207 = vector.load %arg24[%c0_96, %c0_97, %c0_98] : memref<2x1x32xf32, #tpu.memory_space<vmem>>, vector<1x1x32xf32>
    %208 = vector.shape_cast %207 : vector<1x1x32xf32> to vector<1x32xf32>
    %cst_99 = arith.constant dense<0.000000e+00> : vector<16xf32>
    %209 = vector.multi_reduction <add>, %204, %cst_99 [1] : vector<16x32xf32> to vector<16xf32>
    %210 = vector.shape_cast %209 : vector<16xf32> to vector<16x1xf32>
    %cst_100 = arith.constant 3.200000e+01 : f32
    %211 = vector.broadcast %cst_100 : f32 to vector<16x1xf32>
    %212 = arith.divf %210, %211 : vector<16x1xf32>
    %213 = vector.broadcast %212 : vector<16x1xf32> to vector<16x32xf32>
    %214 = arith.subf %204, %213 : vector<16x32xf32>
    %215 = arith.mulf %214, %214 : vector<16x32xf32>
    %cst_101 = arith.constant dense<0.000000e+00> : vector<16xf32>
    %216 = vector.multi_reduction <add>, %215, %cst_101 [1] : vector<16x32xf32> to vector<16xf32>
    %217 = vector.shape_cast %216 : vector<16xf32> to vector<16x1xf32>
    %cst_102 = arith.constant 3.200000e+01 : f32
    %218 = vector.broadcast %cst_102 : f32 to vector<16x1xf32>
    %219 = arith.divf %217, %218 : vector<16x1xf32>
    %220 = vector.broadcast %212 : vector<16x1xf32> to vector<16x32xf32>
    %221 = arith.subf %204, %220 : vector<16x32xf32>
    %cst_103 = arith.constant 9.99999996E-13 : f32
    %222 = vector.broadcast %cst_103 : f32 to vector<16x1xf32>
    %223 = arith.addf %219, %222 : vector<16x1xf32>
    %224 = math.rsqrt %223 : vector<16x1xf32>
    %225 = vector.broadcast %224 : vector<16x1xf32> to vector<16x32xf32>
    %226 = arith.mulf %221, %225 : vector<16x32xf32>
    %227 = vector.broadcast %206 : vector<1x32xf32> to vector<16x32xf32>
    %228 = arith.mulf %226, %227 : vector<16x32xf32>
    %229 = vector.broadcast %208 : vector<1x32xf32> to vector<16x32xf32>
    %230 = arith.addf %228, %229 : vector<16x32xf32>
    %231 = arith.truncf %230 : vector<16x32xf32> to vector<16x32xbf16>
    %c1 = arith.constant 1 : index
    %c0_104 = arith.constant 0 : index
    %c0_105 = arith.constant 0 : index
    %232 = vector.load %arg9[%c1, %c0_104, %c0_105] : memref<2x32x32xbf16, #tpu.memory_space<vmem>>, vector<1x32x32xbf16>
    %233 = vector.shape_cast %232 : vector<1x32x32xbf16> to vector<32x32xbf16>
    %cst_106 = arith.constant dense<0.000000e+00> : vector<16x32xf32>
    %234 = tpu.matmul %231, %233, %cst_106 {dimension_numbers = #tpu.dot_dimension_numbers<[1], [0], [0], [1], [0, 0, 1, 1], [], []>} : vector<16x32xbf16>, vector<32x32xbf16>, vector<16x32xf32> -> vector<16x32xf32>
    %c1_107 = arith.constant 1 : index
    %c0_108 = arith.constant 0 : index
    %c0_109 = arith.constant 0 : index
    %235 = vector.load %arg10[%c1_107, %c0_108, %c0_109] : memref<2x1x32xf32, #tpu.memory_space<vmem>>, vector<1x1x32xf32>
    %236 = vector.shape_cast %235 : vector<1x1x32xf32> to vector<1x32xf32>
    %237 = vector.broadcast %236 : vector<1x32xf32> to vector<16x32xf32>
    %238 = arith.addf %234, %237 : vector<16x32xf32>
    %c1_110 = arith.constant 1 : index
    %c0_111 = arith.constant 0 : index
    %c0_112 = arith.constant 0 : index
    %239 = vector.load %arg11[%c1_110, %c0_111, %c0_112] : memref<2x32x32xbf16, #tpu.memory_space<vmem>>, vector<1x32x32xbf16>
    %240 = vector.shape_cast %239 : vector<1x32x32xbf16> to vector<32x32xbf16>
    %cst_113 = arith.constant dense<0.000000e+00> : vector<16x32xf32>
    %241 = tpu.matmul %231, %240, %cst_113 {dimension_numbers = #tpu.dot_dimension_numbers<[1], [0], [0], [1], [0, 0, 1, 1], [], []>} : vector<16x32xbf16>, vector<32x32xbf16>, vector<16x32xf32> -> vector<16x32xf32>
    %c1_114 = arith.constant 1 : index
    %c0_115 = arith.constant 0 : index
    %c0_116 = arith.constant 0 : index
    %242 = vector.load %arg12[%c1_114, %c0_115, %c0_116] : memref<2x1x32xf32, #tpu.memory_space<vmem>>, vector<1x1x32xf32>
    %243 = vector.shape_cast %242 : vector<1x1x32xf32> to vector<1x32xf32>
    %244 = vector.broadcast %243 : vector<1x32xf32> to vector<16x32xf32>
    %245 = arith.addf %241, %244 : vector<16x32xf32>
    %c1_117 = arith.constant 1 : index
    %c0_118 = arith.constant 0 : index
    %c0_119 = arith.constant 0 : index
    %246 = vector.load %arg13[%c1_117, %c0_118, %c0_119] : memref<2x32x32xbf16, #tpu.memory_space<vmem>>, vector<1x32x32xbf16>
    %247 = vector.shape_cast %246 : vector<1x32x32xbf16> to vector<32x32xbf16>
    %cst_120 = arith.constant dense<0.000000e+00> : vector<16x32xf32>
    %248 = tpu.matmul %231, %247, %cst_120 {dimension_numbers = #tpu.dot_dimension_numbers<[1], [0], [0], [1], [0, 0, 1, 1], [], []>} : vector<16x32xbf16>, vector<32x32xbf16>, vector<16x32xf32> -> vector<16x32xf32>
    %c1_121 = arith.constant 1 : index
    %c0_122 = arith.constant 0 : index
    %c0_123 = arith.constant 0 : index
    %249 = vector.load %arg14[%c1_121, %c0_122, %c0_123] : memref<2x1x32xf32, #tpu.memory_space<vmem>>, vector<1x1x32xf32>
    %250 = vector.shape_cast %249 : vector<1x1x32xf32> to vector<1x32xf32>
    %251 = vector.broadcast %250 : vector<1x32xf32> to vector<16x32xf32>
    %252 = arith.addf %248, %251 : vector<16x32xf32>
    %cst_124 = arith.constant 2.500000e-01 : f32
    %253 = vector.broadcast %cst_124 : f32 to vector<16x32xf32>
    %254 = arith.mulf %238, %253 : vector<16x32xf32>
    %255 = vector.shape_cast %254 : vector<16x32xf32> to vector<2x8x32xf32>
    %256 = vector.shape_cast %245 : vector<16x32xf32> to vector<2x8x32xf32>
    %257 = arith.truncf %256 : vector<2x8x32xf32> to vector<2x8x32xbf16>
    %258 = vector.shape_cast %252 : vector<16x32xf32> to vector<2x8x32xf32>
    %cst_125 = arith.constant 0.000000e+00 : f32
    %259 = vector.broadcast %cst_125 : f32 to vector<2x8x32xf32>
    %260 = vector.broadcast %58 : vector<1x1x32xf32> to vector<2x8x32xf32>
    %261 = arith.mulf %255, %260 : vector<2x8x32xf32>
    %262 = arith.truncf %261 : vector<2x8x32xf32> to vector<2x8x32xbf16>
    "tpu.trace_start"() <{level = 10 : i32, message = "bqd,bkd->bqk"}> : () -> ()
    %cst_126 = arith.constant dense<0.000000e+00> : vector<2x8x8xf32>
    %263 = tpu.matmul %262, %257, %cst_126 {dimension_numbers = #tpu.dot_dimension_numbers<[2], [2], [1], [1], [0, 0, 0, 1, 1, 1], [0], [0]>} : vector<2x8x32xbf16>, vector<2x8x32xbf16>, vector<2x8x8xf32> -> vector<2x8x8xf32>
    "tpu.trace_stop"() : () -> ()
    %264 = vector.broadcast %50 : vector<2x1x8xf32> to vector<2x8x8xf32>
    %265 = arith.addf %263, %264 : vector<2x8x8xf32>
    %cst_127 = arith.constant dense<0xFF800000> : vector<2x8xf32>
    %266 = vector.multi_reduction <maximumf>, %265, %cst_127 [2] : vector<2x8x8xf32> to vector<2x8xf32>
    %267 = vector.shape_cast %266 : vector<2x8xf32> to vector<2x8x1xf32>
    %268 = vector.broadcast %267 : vector<2x8x1xf32> to vector<2x8x8xf32>
    %269 = arith.subf %265, %268 : vector<2x8x8xf32>
    %270 = math.exp %269 : vector<2x8x8xf32>
    %cst_128 = arith.constant dense<0.000000e+00> : vector<2x8xf32>
    %271 = vector.multi_reduction <add>, %270, %cst_128 [2] : vector<2x8x8xf32> to vector<2x8xf32>
    %272 = vector.shape_cast %271 : vector<2x8xf32> to vector<2x8x1xf32>
    %273 = tpu.reciprocal %272 {approx = true} : vector<2x8x1xf32> -> vector<2x8x1xf32>
    %274 = vector.broadcast %273 : vector<2x8x1xf32> to vector<2x8x8xf32>
    %275 = arith.mulf %270, %274 : vector<2x8x8xf32>
    %276 = vector.broadcast %58 : vector<1x1x32xf32> to vector<2x8x32xf32>
    %277 = arith.mulf %258, %276 : vector<2x8x32xf32>
    %278 = arith.truncf %277 : vector<2x8x32xf32> to vector<2x8x32xbf16>
    %279 = arith.truncf %275 : vector<2x8x8xf32> to vector<2x8x8xbf16>
    "tpu.trace_start"() <{level = 10 : i32, message = "bqk,bkd->bqd"}> : () -> ()
    %cst_129 = arith.constant dense<0.000000e+00> : vector<2x8x32xf32>
    %280 = tpu.matmul %279, %278, %cst_129 {dimension_numbers = #tpu.dot_dimension_numbers<[2], [1], [1], [2], [0, 0, 0, 1, 1, 2], [0], [0]>} : vector<2x8x8xbf16>, vector<2x8x32xbf16>, vector<2x8x32xf32> -> vector<2x8x32xf32>
    "tpu.trace_stop"() : () -> ()
    %281 = arith.addf %259, %280 : vector<2x8x32xf32>
    %282 = vector.broadcast %65 : vector<1x1x32xf32> to vector<2x8x32xf32>
    %283 = arith.mulf %255, %282 : vector<2x8x32xf32>
    %284 = arith.truncf %283 : vector<2x8x32xf32> to vector<2x8x32xbf16>
    "tpu.trace_start"() <{level = 10 : i32, message = "bqd,bkd->bqk"}> : () -> ()
    %cst_130 = arith.constant dense<0.000000e+00> : vector<2x8x8xf32>
    %285 = tpu.matmul %284, %257, %cst_130 {dimension_numbers = #tpu.dot_dimension_numbers<[2], [2], [1], [1], [0, 0, 0, 1, 1, 1], [0], [0]>} : vector<2x8x32xbf16>, vector<2x8x32xbf16>, vector<2x8x8xf32> -> vector<2x8x8xf32>
    "tpu.trace_stop"() : () -> ()
    %286 = vector.broadcast %50 : vector<2x1x8xf32> to vector<2x8x8xf32>
    %287 = arith.addf %285, %286 : vector<2x8x8xf32>
    %cst_131 = arith.constant dense<0xFF800000> : vector<2x8xf32>
    %288 = vector.multi_reduction <maximumf>, %287, %cst_131 [2] : vector<2x8x8xf32> to vector<2x8xf32>
    %289 = vector.shape_cast %288 : vector<2x8xf32> to vector<2x8x1xf32>
    %290 = vector.broadcast %289 : vector<2x8x1xf32> to vector<2x8x8xf32>
    %291 = arith.subf %287, %290 : vector<2x8x8xf32>
    %292 = math.exp %291 : vector<2x8x8xf32>
    %cst_132 = arith.constant dense<0.000000e+00> : vector<2x8xf32>
    %293 = vector.multi_reduction <add>, %292, %cst_132 [2] : vector<2x8x8xf32> to vector<2x8xf32>
    %294 = vector.shape_cast %293 : vector<2x8xf32> to vector<2x8x1xf32>
    %295 = tpu.reciprocal %294 {approx = true} : vector<2x8x1xf32> -> vector<2x8x1xf32>
    %296 = vector.broadcast %295 : vector<2x8x1xf32> to vector<2x8x8xf32>
    %297 = arith.mulf %292, %296 : vector<2x8x8xf32>
    %298 = vector.broadcast %65 : vector<1x1x32xf32> to vector<2x8x32xf32>
    %299 = arith.mulf %258, %298 : vector<2x8x32xf32>
    %300 = arith.truncf %299 : vector<2x8x32xf32> to vector<2x8x32xbf16>
    %301 = arith.truncf %297 : vector<2x8x8xf32> to vector<2x8x8xbf16>
    "tpu.trace_start"() <{level = 10 : i32, message = "bqk,bkd->bqd"}> : () -> ()
    %cst_133 = arith.constant dense<0.000000e+00> : vector<2x8x32xf32>
    %302 = tpu.matmul %301, %300, %cst_133 {dimension_numbers = #tpu.dot_dimension_numbers<[2], [1], [1], [2], [0, 0, 0, 1, 1, 2], [0], [0]>} : vector<2x8x8xbf16>, vector<2x8x32xbf16>, vector<2x8x32xf32> -> vector<2x8x32xf32>
    "tpu.trace_stop"() : () -> ()
    %303 = arith.addf %281, %302 : vector<2x8x32xf32>
    %304 = vector.shape_cast %303 : vector<2x8x32xf32> to vector<16x32xf32>
    %305 = arith.truncf %304 : vector<16x32xf32> to vector<16x32xbf16>
    %c1_134 = arith.constant 1 : index
    %c0_135 = arith.constant 0 : index
    %c0_136 = arith.constant 0 : index
    %306 = vector.load %arg15[%c1_134, %c0_135, %c0_136] : memref<2x32x32xbf16, #tpu.memory_space<vmem>>, vector<1x32x32xbf16>
    %307 = vector.shape_cast %306 : vector<1x32x32xbf16> to vector<32x32xbf16>
    %cst_137 = arith.constant dense<0.000000e+00> : vector<16x32xf32>
    %308 = tpu.matmul %305, %307, %cst_137 {dimension_numbers = #tpu.dot_dimension_numbers<[1], [0], [0], [1], [0, 0, 1, 1], [], []>} : vector<16x32xbf16>, vector<32x32xbf16>, vector<16x32xf32> -> vector<16x32xf32>
    %c1_138 = arith.constant 1 : index
    %c0_139 = arith.constant 0 : index
    %c0_140 = arith.constant 0 : index
    %309 = vector.load %arg16[%c1_138, %c0_139, %c0_140] : memref<2x1x32xf32, #tpu.memory_space<vmem>>, vector<1x1x32xf32>
    %310 = vector.shape_cast %309 : vector<1x1x32xf32> to vector<1x32xf32>
    %311 = vector.broadcast %310 : vector<1x32xf32> to vector<16x32xf32>
    %312 = arith.addf %308, %311 : vector<16x32xf32>
    %313 = arith.addf %230, %312 : vector<16x32xf32>
    %c1_141 = arith.constant 1 : index
    %c0_142 = arith.constant 0 : index
    %c0_143 = arith.constant 0 : index
    %314 = vector.load %arg17[%c1_141, %c0_142, %c0_143] : memref<2x1x32xf32, #tpu.memory_space<vmem>>, vector<1x1x32xf32>
    %315 = vector.shape_cast %314 : vector<1x1x32xf32> to vector<1x32xf32>
    %c1_144 = arith.constant 1 : index
    %c0_145 = arith.constant 0 : index
    %c0_146 = arith.constant 0 : index
    %316 = vector.load %arg18[%c1_144, %c0_145, %c0_146] : memref<2x1x32xf32, #tpu.memory_space<vmem>>, vector<1x1x32xf32>
    %317 = vector.shape_cast %316 : vector<1x1x32xf32> to vector<1x32xf32>
    %cst_147 = arith.constant dense<0.000000e+00> : vector<16xf32>
    %318 = vector.multi_reduction <add>, %313, %cst_147 [1] : vector<16x32xf32> to vector<16xf32>
    %319 = vector.shape_cast %318 : vector<16xf32> to vector<16x1xf32>
    %cst_148 = arith.constant 3.200000e+01 : f32
    %320 = vector.broadcast %cst_148 : f32 to vector<16x1xf32>
    %321 = arith.divf %319, %320 : vector<16x1xf32>
    %322 = vector.broadcast %321 : vector<16x1xf32> to vector<16x32xf32>
    %323 = arith.subf %313, %322 : vector<16x32xf32>
    %324 = arith.mulf %323, %323 : vector<16x32xf32>
    %cst_149 = arith.constant dense<0.000000e+00> : vector<16xf32>
    %325 = vector.multi_reduction <add>, %324, %cst_149 [1] : vector<16x32xf32> to vector<16xf32>
    %326 = vector.shape_cast %325 : vector<16xf32> to vector<16x1xf32>
    %cst_150 = arith.constant 3.200000e+01 : f32
    %327 = vector.broadcast %cst_150 : f32 to vector<16x1xf32>
    %328 = arith.divf %326, %327 : vector<16x1xf32>
    %329 = vector.broadcast %321 : vector<16x1xf32> to vector<16x32xf32>
    %330 = arith.subf %313, %329 : vector<16x32xf32>
    %cst_151 = arith.constant 9.99999996E-13 : f32
    %331 = vector.broadcast %cst_151 : f32 to vector<16x1xf32>
    %332 = arith.addf %328, %331 : vector<16x1xf32>
    %333 = math.rsqrt %332 : vector<16x1xf32>
    %334 = vector.broadcast %333 : vector<16x1xf32> to vector<16x32xf32>
    %335 = arith.mulf %330, %334 : vector<16x32xf32>
    %336 = vector.broadcast %315 : vector<1x32xf32> to vector<16x32xf32>
    %337 = arith.mulf %335, %336 : vector<16x32xf32>
    %338 = vector.broadcast %317 : vector<1x32xf32> to vector<16x32xf32>
    %339 = arith.addf %337, %338 : vector<16x32xf32>
    %340 = arith.truncf %339 : vector<16x32xf32> to vector<16x32xbf16>
    %c1_152 = arith.constant 1 : index
    %c0_153 = arith.constant 0 : index
    %c0_154 = arith.constant 0 : index
    %341 = vector.load %arg19[%c1_152, %c0_153, %c0_154] : memref<2x32x64xbf16, #tpu.memory_space<vmem>>, vector<1x32x64xbf16>
    %342 = vector.shape_cast %341 : vector<1x32x64xbf16> to vector<32x64xbf16>
    %cst_155 = arith.constant dense<0.000000e+00> : vector<16x64xf32>
    %343 = tpu.matmul %340, %342, %cst_155 {dimension_numbers = #tpu.dot_dimension_numbers<[1], [0], [0], [1], [0, 0, 1, 1], [], []>} : vector<16x32xbf16>, vector<32x64xbf16>, vector<16x64xf32> -> vector<16x64xf32>
    %c1_156 = arith.constant 1 : index
    %c0_157 = arith.constant 0 : index
    %c0_158 = arith.constant 0 : index
    %344 = vector.load %arg20[%c1_156, %c0_157, %c0_158] : memref<2x1x64xf32, #tpu.memory_space<vmem>>, vector<1x1x64xf32>
    %345 = vector.shape_cast %344 : vector<1x1x64xf32> to vector<1x64xf32>
    %346 = vector.broadcast %345 : vector<1x64xf32> to vector<16x64xf32>
    %347 = arith.addf %343, %346 : vector<16x64xf32>
    %cst_159 = arith.constant 5.000000e-01 : f32
    %348 = vector.broadcast %cst_159 : f32 to vector<16x64xf32>
    %349 = arith.mulf %348, %347 : vector<16x64xf32>
    %cst_160 = arith.constant 4.471500e-02 : f32
    %350 = vector.broadcast %cst_160 : f32 to vector<16x64xf32>
    %351 = arith.mulf %350, %347 : vector<16x64xf32>
    %352 = arith.mulf %351, %347 : vector<16x64xf32>
    %353 = arith.mulf %352, %347 : vector<16x64xf32>
    %354 = arith.addf %347, %353 : vector<16x64xf32>
    %cst_161 = arith.constant 0.797884583 : f32
    %355 = vector.broadcast %cst_161 : f32 to vector<16x64xf32>
    %356 = arith.mulf %355, %354 : vector<16x64xf32>
    %357 = math.tanh %356 : vector<16x64xf32>
    %cst_162 = arith.constant 1.000000e+00 : f32
    %358 = vector.broadcast %cst_162 : f32 to vector<16x64xf32>
    %359 = arith.addf %358, %357 : vector<16x64xf32>
    %360 = arith.mulf %349, %359 : vector<16x64xf32>
    %361 = arith.truncf %360 : vector<16x64xf32> to vector<16x64xbf16>
    %c1_163 = arith.constant 1 : index
    %c0_164 = arith.constant 0 : index
    %c0_165 = arith.constant 0 : index
    %362 = vector.load %arg21[%c1_163, %c0_164, %c0_165] : memref<2x64x32xbf16, #tpu.memory_space<vmem>>, vector<1x64x32xbf16>
    %363 = vector.shape_cast %362 : vector<1x64x32xbf16> to vector<64x32xbf16>
    %cst_166 = arith.constant dense<0.000000e+00> : vector<16x32xf32>
    %364 = tpu.matmul %361, %363, %cst_166 {dimension_numbers = #tpu.dot_dimension_numbers<[1], [0], [0], [1], [0, 0, 1, 1], [], []>} : vector<16x64xbf16>, vector<64x32xbf16>, vector<16x32xf32> -> vector<16x32xf32>
    %c1_167 = arith.constant 1 : index
    %c0_168 = arith.constant 0 : index
    %c0_169 = arith.constant 0 : index
    %365 = vector.load %arg22[%c1_167, %c0_168, %c0_169] : memref<2x1x32xf32, #tpu.memory_space<vmem>>, vector<1x1x32xf32>
    %366 = vector.shape_cast %365 : vector<1x1x32xf32> to vector<1x32xf32>
    %367 = vector.broadcast %366 : vector<1x32xf32> to vector<16x32xf32>
    %368 = arith.addf %364, %367 : vector<16x32xf32>
    %369 = arith.addf %339, %368 : vector<16x32xf32>
    %c1_170 = arith.constant 1 : index
    %c0_171 = arith.constant 0 : index
    %c0_172 = arith.constant 0 : index
    %370 = vector.load %arg23[%c1_170, %c0_171, %c0_172] : memref<2x1x32xf32, #tpu.memory_space<vmem>>, vector<1x1x32xf32>
    %371 = vector.shape_cast %370 : vector<1x1x32xf32> to vector<1x32xf32>
    %c1_173 = arith.constant 1 : index
    %c0_174 = arith.constant 0 : index
    %c0_175 = arith.constant 0 : index
    %372 = vector.load %arg24[%c1_173, %c0_174, %c0_175] : memref<2x1x32xf32, #tpu.memory_space<vmem>>, vector<1x1x32xf32>
    %373 = vector.shape_cast %372 : vector<1x1x32xf32> to vector<1x32xf32>
    %cst_176 = arith.constant dense<0.000000e+00> : vector<16xf32>
    %374 = vector.multi_reduction <add>, %369, %cst_176 [1] : vector<16x32xf32> to vector<16xf32>
    %375 = vector.shape_cast %374 : vector<16xf32> to vector<16x1xf32>
    %cst_177 = arith.constant 3.200000e+01 : f32
    %376 = vector.broadcast %cst_177 : f32 to vector<16x1xf32>
    %377 = arith.divf %375, %376 : vector<16x1xf32>
    %378 = vector.broadcast %377 : vector<16x1xf32> to vector<16x32xf32>
    %379 = arith.subf %369, %378 : vector<16x32xf32>
    %380 = arith.mulf %379, %379 : vector<16x32xf32>
    %cst_178 = arith.constant dense<0.000000e+00> : vector<16xf32>
    %381 = vector.multi_reduction <add>, %380, %cst_178 [1] : vector<16x32xf32> to vector<16xf32>
    %382 = vector.shape_cast %381 : vector<16xf32> to vector<16x1xf32>
    %cst_179 = arith.constant 3.200000e+01 : f32
    %383 = vector.broadcast %cst_179 : f32 to vector<16x1xf32>
    %384 = arith.divf %382, %383 : vector<16x1xf32>
    %385 = vector.broadcast %377 : vector<16x1xf32> to vector<16x32xf32>
    %386 = arith.subf %369, %385 : vector<16x32xf32>
    %cst_180 = arith.constant 9.99999996E-13 : f32
    %387 = vector.broadcast %cst_180 : f32 to vector<16x1xf32>
    %388 = arith.addf %384, %387 : vector<16x1xf32>
    %389 = math.rsqrt %388 : vector<16x1xf32>
    %390 = vector.broadcast %389 : vector<16x1xf32> to vector<16x32xf32>
    %391 = arith.mulf %386, %390 : vector<16x32xf32>
    %392 = vector.broadcast %371 : vector<1x32xf32> to vector<16x32xf32>
    %393 = arith.mulf %391, %392 : vector<16x32xf32>
    %394 = vector.broadcast %373 : vector<1x32xf32> to vector<16x32xf32>
    %395 = arith.addf %393, %394 : vector<16x32xf32>
    %396 = arith.truncf %395 : vector<16x32xf32> to vector<16x32xbf16>
    %c0_181 = arith.constant 0 : index
    %c0_182 = arith.constant 0 : index
    %397 = vector.load %arg25[%c0_181, %c0_182] : memref<32x16xbf16, #tpu.memory_space<vmem>>, vector<32x16xbf16>
    %cst_183 = arith.constant dense<0.000000e+00> : vector<16x16xf32>
    %398 = tpu.matmul %396, %397, %cst_183 {dimension_numbers = #tpu.dot_dimension_numbers<[1], [0], [0], [1], [0, 0, 1, 1], [], []>} : vector<16x32xbf16>, vector<32x16xbf16>, vector<16x16xf32> -> vector<16x16xf32>
    %c0_184 = arith.constant 0 : index
    %c0_185 = arith.constant 0 : index
    %399 = vector.load %arg26[%c0_184, %c0_185] : memref<1x16xf32, #tpu.memory_space<vmem>>, vector<1x16xf32>
    %400 = vector.broadcast %399 : vector<1x16xf32> to vector<16x16xf32>
    %401 = arith.addf %398, %400 : vector<16x16xf32>
    %cst_186 = arith.constant 5.000000e-01 : f32
    %402 = vector.broadcast %cst_186 : f32 to vector<16x16xf32>
    %403 = arith.mulf %402, %401 : vector<16x16xf32>
    %cst_187 = arith.constant 4.471500e-02 : f32
    %404 = vector.broadcast %cst_187 : f32 to vector<16x16xf32>
    %405 = arith.mulf %404, %401 : vector<16x16xf32>
    %406 = arith.mulf %405, %401 : vector<16x16xf32>
    %407 = arith.mulf %406, %401 : vector<16x16xf32>
    %408 = arith.addf %401, %407 : vector<16x16xf32>
    %cst_188 = arith.constant 0.797884583 : f32
    %409 = vector.broadcast %cst_188 : f32 to vector<16x16xf32>
    %410 = arith.mulf %409, %408 : vector<16x16xf32>
    %411 = math.tanh %410 : vector<16x16xf32>
    %cst_189 = arith.constant 1.000000e+00 : f32
    %412 = vector.broadcast %cst_189 : f32 to vector<16x16xf32>
    %413 = arith.addf %412, %411 : vector<16x16xf32>
    %414 = arith.mulf %403, %413 : vector<16x16xf32>
    %415 = arith.truncf %414 : vector<16x16xf32> to vector<16x16xbf16>
    %c0_190 = arith.constant 0 : index
    %c0_191 = arith.constant 0 : index
    %416 = vector.load %arg27[%c0_190, %c0_191] : memref<16x4xbf16, #tpu.memory_space<vmem>>, vector<16x4xbf16>
    %cst_192 = arith.constant dense<0.000000e+00> : vector<16x4xf32>
    %417 = tpu.matmul %415, %416, %cst_192 {dimension_numbers = #tpu.dot_dimension_numbers<[1], [0], [0], [1], [0, 0, 1, 1], [], []>} : vector<16x16xbf16>, vector<16x4xbf16>, vector<16x4xf32> -> vector<16x4xf32>
    %c0_193 = arith.constant 0 : index
    %c0_194 = arith.constant 0 : index
    %418 = vector.load %arg28[%c0_193, %c0_194] : memref<1x4xf32, #tpu.memory_space<vmem>>, vector<1x4xf32>
    %419 = vector.broadcast %418 : vector<1x4xf32> to vector<16x4xf32>
    %420 = arith.addf %417, %419 : vector<16x4xf32>
    %cst_195 = arith.constant 0.000000e+00 : f32
    %421 = vector.broadcast %cst_195 : f32 to vector<16x108xf32>
    %422 = tpu.concatenate %414, %420, %421 in 1 : vector<16x16xf32>, vector<16x4xf32>, vector<16x108xf32> -> vector<16x128xf32>
    %c0_196 = arith.constant 0 : index
    %c0_197 = arith.constant 0 : index
    %423 = vector.load %arg29[%c0_196, %c0_197] : memref<16x128xf32, #tpu.memory_space<vmem>>, vector<16x128xf32>
    tpu.vector_store %arg29[%c0_196, %c0_197], %422 {strides = array<i32>} : memref<16x128xf32, #tpu.memory_space<vmem>>, vector<16x128xf32>,
    return
  }
}

</mosaic_0001>

<bundles_post_ra>
// kernel: tile.0
= control target key start
LH: loop header
LB: loop body
LE: loop exit
PB: predicated region body
PF: predicated region fallthrough
CT: control target
= control target key end

     0   :  { %s67_s8 = smov 125   ;;  %vm8_vm0 = vcmask 7168   ;;  %s68_s11 = smov 126   ;;  %s118_s0 = inlined_call_operand.vmem [shape: s32[2,8], index: 0, kind: input, shape index: {}]   ;;  %s119_s1 = inlined_call_operand.vmem [shape: s32[16,1], index: 1, kind: output, shape index: {}]  }
   0x1   :  { %v5_v0 = vld [vmem:[%s118_s0] sm:$0x3]  ;;  %s66_s0 = smov 127   ;;  %s69_s12 = smov 124  }
   0x2   :  { %6 = vst [vmem:[#allocation0] sm:$0x3] %v5_v0  ;;  %s70_s13 = smov 123   ;;  %s71_s14 = smov 122  }
   0x3   :  { %s72_s15 = smov 121  }
   0x9   :  { %v10_v1 = vld [vmem:[#allocation0] sm:$0x3]  }
   0xa   :  { %v22_v2 = vld [vmem:[#allocation0] sm:$0x3]   ;;  %11 = vrot.lane.b32.xlu0 %v10_v1, %s66_s0 }
   0xb   :  { %23 = vrot.lane.b32.xlu1 %v22_v2, %s67_s8  ;;  %v16_v3 = vld [vmem:[#allocation0] sm:$0x3]  }
   0xc   :  { %v28_v4 = vld [vmem:[#allocation0] sm:$0x3]  }
   0xd   :  { %v7_v5 = vld [vmem:[#allocation0] sm:$0x3]  }
   0xe   :  { %9 = vst.msk [vmem:[%s119_s1] ss:$8 sm:$0x3] %vm8_vm0, %v7_v5   ;;  %17 = vrot.lane.b32.xlu0 %v16_v3, %s68_s11  ;;  %v34_v6 = vld [vmem:[#allocation0] sm:$0x3]  }
   0xf   :  { %29 = vrot.lane.b32.xlu1 %v28_v4, %s69_s12  ;;  %v40_v7 = vld [vmem:[#allocation0] sm:$0x3]  }
  0x10   :  { %v46_v8 = vld [vmem:[#allocation0] sm:$0x3]  }
  0x12   :  { %35 = vrot.lane.b32.xlu0 %v34_v6, %s70_s13 }
  0x13   :  { %41 = vrot.lane.b32.xlu1 %v40_v7, %s71_s14 }
  0x16   :  { %47 = vrot.lane.b32.xlu0 %v46_v8, %s72_s15 }
  0x7c   :  { %v12_v9 = vpop.permute.xlu0 %11  }
  0x7d   :  { %v24_v10 = vpop.permute.xlu1 %23   ;;  %52 = vst.msk [vmem:[%s119_s1 + $0x1] ss:$8 sm:$0x3] %vm8_vm0, %v12_v9  }
  0x7e   :  { %54 = vst.msk [vmem:[%s119_s1 + $0x3] ss:$8 sm:$0x3] %vm8_vm0, %v24_v10  }
  0x80   :  { %v18_v11 = vpop.permute.xlu0 %17  }
  0x81   :  { %v30_v12 = vpop.permute.xlu1 %29   ;;  %53 = vst.msk [vmem:[%s119_s1 + $0x2] ss:$8 sm:$0x3] %vm8_vm0, %v18_v11  }
  0x82   :  { %55 = vst.msk [vmem:[%s119_s1 + $0x4] ss:$8 sm:$0x3] %vm8_vm0, %v30_v12  }
  0x84   :  { %v36_v13 = vpop.permute.xlu0 %35  }
  0x85   :  { %v42_v14 = vpop.permute.xlu1 %41   ;;  %56 = vst.msk [vmem:[%s119_s1 + $0x5] ss:$8 sm:$0x3] %vm8_vm0, %v36_v13  }
  0x86   :  { %57 = vst.msk [vmem:[%s119_s1 + $0x6] ss:$8 sm:$0x3] %vm8_vm0, %v42_v14  }
  0x88   :  { %v48_v15 = vpop.permute.xlu0 %47  }
  0x89   :  { %58 = vst.msk [vmem:[%s119_s1 + $0x7] ss:$8 sm:$0x3] %vm8_vm0, %v48_v15  }

// kernel: bert_classifier_forward.1
= control target key start
LH: loop header
LB: loop body
LE: loop exit
PB: predicated region body
PF: predicated region fallthrough
CT: control target
= control target key end

     0   :  { %v3257_v0 = vmov 0   ;;  %s3258_s3 = smov 2   ;;  %s3259_s10 = smov 1   ;;  %vm257_vm0 = vcmask 1043456   ;;  %vm358_vm1 = vcmask 1041408   ;;  %v3263_v23 = vmov 0.0   ;;  %s3762_s0 = inlined_call_operand.smem [shape: u32[30], index: -1, kind: input, shape index: {}] }
   0x1   :  { %3161 = vset.pattern.permute.xlu1 %v3257_v0  ;;  %3160 = vset.pattern.permute.xlu0 %v3257_v0  ;;  %s2605_s6 = sld [smem:[%s3762_s0 + %s3258_s3]]   ;;  %s3260_s14 = smov 4   ;;  %v125_v24 = vlaneseq  ;;  %vm168_vm2 = vcmask 130048   ;;  %vm250_vm4 = vcmask 818176   ;;  %vm351_vm8 = vcmask 15360  }
   0x2   :  { %s1_s9 = sld [smem:[%s3762_s0]]   ;;  %s3261_s18 = smov 5   ;;  %vm441_vm11 = vcmask 261120   ;;  %vm3265_vm12 = vmmov 0  }
   0x3   :  { %s2604_s13 = sld [smem:[%s3762_s0 + %s3259_s10]]   ;;  %s3262_s22 = smov 6   ;;  %v3331_v25 = vand.u32 127, %v125_v24 }
   0x4   :  { %s3306_s17 = sld [smem:[%s3762_s0 + %s3260_s14]]   ;;  %s3264_s26 = smov 9  }
   0x5   :  { %s2608_s21 = sld [smem:[%s3762_s0 + %s3261_s18]]   ;;  %s3266_s30 = smov 11   ;;  %vm488_vm13 = vcmp.lt.s32.totalorder %v3331_v25, 16  ;;  %vm492_vm14 = vcmp.ge.s32.totalorder %v3331_v25, 16  ;;  %vm493_vm15 = vcmp.lt.s32.totalorder %v3331_v25, 32 }
   0x6   :  { %s2609_s25 = sld [smem:[%s3762_s0 + %s3262_s22]]   ;;  %s3267_s4 = smov 13  }
   0x7   :  { %v152_v1 = vld [vmem:[%s2605_s6] sm:$0xff]  ;;  %v153_v3 = vld [vmem:[%s2605_s6 + $0x8] sm:$0xff]  ;;  %s3356_s29 = sld [smem:[%s3762_s0 + %s3264_s26]]   ;;  %s3268_s8 = smov 7  }
   0x8   :  { %155 = vperm.xlu0 %3160, %v152_v1   ;;  %v123_v2 = vld [vmem:[%s1_s9] sm:$0xff]  ;;  %v124_v4 = vld [vmem:[%s1_s9 + $0x8] sm:$0xff]  ;;  %s3367_s3 = sld [smem:[%s3762_s0 + %s3266_s30]]   ;;  %s3269_s12 = smov 8  }
   0x9   :  { %128 = vperm.xlu1 %3161, %v123_v2   ;;  %v336_v8 = vld [vmem:[%s2604_s13] sm:$0xff]  ;;  %v337_v10 = vld [vmem:[%s2604_s13 + $0x8] sm:$0xff]  ;;  %s3374_s7 = sld [smem:[%s3762_s0 + %s3267_s4]]   ;;  %s3270_s16 = smov 10  }
   0xa   :  { %v151_v5 = vld [vmem:[%s3306_s17 + $0x60] sm:$0xf]  ;;  %v150_v6 = vld [vmem:[%s3306_s17 + $0x58] sm:$0xff]  ;;  %v149_v7 = vld [vmem:[%s3306_s17 + $0x50] sm:$0xff]  ;;  %s2610_s11 = sld [smem:[%s3762_s0 + %s3268_s8]]   ;;  %s3271_s20 = smov 12  }
   0xb   :  { %2880 = vmatprep.subr.msk.mxu1 %vm257_vm0, %v151_v5  ;;  %v167_v9 = vld [vmem:[%s2608_s21 + $0x8] sm:$0xff]  ;;  %v166_v12 = vld [vmem:[%s2608_s21] sm:$0xff]  ;;  %v146_v15 = vld [vmem:[%s3306_s17 + $0x38] sm:$0xff]  ;;  %s2611_s15 = sld [smem:[%s3762_s0 + %s3269_s12]]   ;;  %s3272_s24 = smov 14  }
   0xc   :  { %158 = vperm.xlu0 %3160, %v153_v3   ;;  %2881 = vmatpush3.msk.msra.mxu1 %vm257_vm0, %v151_v5  ;;  %v148_v11 = vld [vmem:[%s3306_s17 + $0x48] sm:$0xff]  ;;  %v147_v13 = vld [vmem:[%s3306_s17 + $0x40] sm:$0xff]  ;;  %v145_v16 = vld [vmem:[%s3306_s17 + $0x30] sm:$0xff]  ;;  %s3408_s19 = sld [smem:[%s3762_s0 + %s3270_s16]]   ;;  %s3273_s28 = smov 3  }
   0xd   :  { %131 = vperm.xlu1 %3161, %v124_v4   ;;  %2882 = vmatprep.subr.mxu1 %v150_v6  ;;  %v350_v14 = vld [vmem:[%s2609_s25] sm:$0x3]  ;;  %v144_v17 = vld [vmem:[%s3306_s17 + $0x28] sm:$0xff]  ;;  %v142_v19 = vld [vmem:[%s3306_s17 + $0x18] sm:$0xff]  ;;  %s3413_s23 = sld [smem:[%s3762_s0 + %s3271_s20]]   ;;  %s3274_s4 = smov 15  }
   0xe   :  { %2883 = vmatpush3.msra.mxu1 %v150_v6  ;;  %2873 = vmatprep.subr.mxu0 %v167_v9  ;;  %v143_v18 = vld [vmem:[%s3306_s17 + $0x20] sm:$0xff]  ;;  %v141_v20 = vld [vmem:[%s3306_s17 + $0x10] sm:$0xff]  ;;  %v140_v21 = vld [vmem:[%s3306_s17 + $0x8] sm:$0xff]  ;;  %s3420_s27 = sld [smem:[%s3762_s0 + %s3272_s24]]   ;;  %s3275_s9 = smov 16  }
   0xf   :  { %2884 = vmatprep.subr.mxu1 %v149_v7  ;;  %2874 = vmatpush3.msra.mxu0 %v167_v9  ;;  %v139_v22 = vld [vmem:[%s3306_s17] sm:$0xff]  ;;  %v3162_v60 = vld [vmem:[%s3356_s29 + $0x8] sm:$0xff]   ;;  %s2606_s2 = sld [smem:[%s3762_s0 + %s3273_s28]]   ;;  %s3276_s13 = smov 19  }
  0x10   :  { %339 = vperm.xlu0 %3160, %v336_v8   ;;  %2885 = vmatpush3.msra.mxu1 %v149_v7  ;;  %v3163_v61 = vld [vmem:[%s3356_s29] sm:$0xff]   ;;  %s3508_s8 = sld [smem:[%s3762_s0 + %s3274_s4]]   ;;  %s3277_s17 = smov 17  }
  0x11   :  { %342 = vperm.xlu1 %3161, %v337_v10   ;;  %2886 = vmatprep.subr.mxu1 %v148_v11  ;;  %v2647_v6 = vld [vmem:[%s2610_s11] ss:$0 sm:$0xff]  ;;  %s3521_s12 = sld [smem:[%s3762_s0 + %s3275_s9]]   ;;  %s3278_s22 = smov 18  }
  0x12   :  { %2887 = vmatpush3.msra.mxu1 %v148_v11  ;;  %2875 = vmatprep.subr.mxu0 %v166_v12  ;;  %v2648_v10 = vld [vmem:[%s2611_s15] ss:$0 sm:$0xff]  ;;  %s3533_s16 = sld [smem:[%s3762_s0 + %s3276_s13]]   ;;  %s3279_s28 = smov 21  }
  0x13   :  { %2888 = vmatprep.subr.mxu1 %v147_v13  ;;  %2876 = vmatpush3.msra.mxu0 %v166_v12  ;;  %s3542_s21 = sld [smem:[%s3762_s0 + %s3277_s17]]   ;;  %s3280_s4 = smov 20  }
  0x14   :  { %2889 = vmatpush3.msra.mxu1 %v147_v13  ;;  %2909 = vmatprep.subr.msk.mxu0 %vm358_vm1, %v350_v14  ;;  %s3547_s26 = sld [smem:[%s3762_s0 + %s3278_s22]]   ;;  %s3281_s11 = smov 22  }
  0x15   :  { %2890 = vmatprep.subr.mxu1 %v146_v15  ;;  %s3573_s10 = sld [smem:[%s3762_s0 + %s3280_s4]]   ;;  %s3283_s20 = smov 24  }
  0x16   :  { %2891 = vmatpush3.msra.mxu1 %v146_v15  ;;  %s3582_s15 = sld [smem:[%s3762_s0 + %s3281_s11]]  }
  0x17   :  { %2892 = vmatprep.subr.mxu1 %v145_v16  ;;  %s3606_s25 = sld [smem:[%s3762_s0 + %s3283_s20]]  }
  0x18   :  { %2893 = vmatpush3.msra.mxu1 %v145_v16  ;;  %v3165_v16 = vld [vmem:[%s3367_s3] sm:$0xff]  }
  0x19   :  { %2894 = vmatprep.subr.mxu1 %v144_v17 }
  0x1a   :  { %2895 = vmatpush3.msra.mxu1 %v144_v17  ;;  %v3166_v17 = vld [vmem:[%s3374_s7 + $0x8] sm:$0xff]  }
  0x1b   :  { %2896 = vmatprep.subr.mxu1 %v143_v18 }
  0x1c   :  { %2897 = vmatpush3.msra.mxu1 %v143_v18  ;;  %v3167_v18 = vld [vmem:[%s3374_s7] sm:$0xff]  }
  0x1d   :  { %2898 = vmatprep.subr.mxu1 %v142_v19 }
  0x1e   :  { %2899 = vmatpush3.msra.mxu1 %v142_v19 }
  0x1f   :  { %2900 = vmatprep.subr.mxu1 %v141_v20 }
  0x20   :  { %2901 = vmatpush3.msra.mxu1 %v141_v20 }
  0x21   :  { %2902 = vmatprep.subr.mxu1 %v140_v21 }
  0x22   :  { %2903 = vmatpush3.msra.mxu1 %v140_v21  ;;  %v2651_v21 = vld [vmem:[%s3408_s19] ss:$0 sm:$0xff] }
  0x23   :  { %2904 = vmatprep.subr.mxu1 %v139_v22 }
  0x24   :  { %2905 = vmatpush3.msra.mxu1 %v139_v22 }
  0x25   :  { %2938 = vmatprep.subr.bf16.mxu1 %v3263_v23 }
  0x83   :  { %v156_v26 = vpop.permute.xlu0 %155 }
  0x84   :  { %vm160_vm3 = vcmp.eq.s32.totalorder %v156_v26, %v3331_v25  ;;  %v129_v27 = vpop.permute.xlu1 %128  ;;  %v2655_v26 = vld [vmem:[%s3413_s23] ss:$0 sm:$0xff] }
  0x85   :  { %vm133_vm5 = vcmp.eq.s32.totalorder %v129_v27, %v3331_v25  ;;  %v2635_v28 = vsel %vm160_vm3, 1.0, %v3263_v23  ;;  %vm805_vm3 = vcmask 64512  }
  0x86   :  { %2877 = vmatprep.mubr.msk.f32.mxu0 %vm168_vm2, %v2635_v28  ;;  %v2633_v29 = vsel %vm133_vm5, 1.0, %v3263_v23 }
  0x87   :  { %v159_v30 = vpop.permute.xlu0 %158  ;;  %2906 = vmatprep.mubr.msk.f32.mxu1 %vm250_vm4, %v2633_v29 }
  0x88   :  { %vm161_vm6 = vcmp.eq.s32.totalorder %v159_v30, %v3331_v25  ;;  %v132_v31 = vpop.permute.xlu1 %131 }
  0x89   :  { %v2636_v32 = vsel %vm161_vm6, 1.0, %v3263_v23  ;;  %vm134_vm7 = vcmp.eq.s32.totalorder %v132_v31, %v3331_v25 }
  0x8a   :  { %v2634_v33 = vsel %vm134_vm7, 1.0, %v3263_v23  ;;  %2878 = vmatmul.mubr.msk.f32.vlgmr.msra.gmra.mxu0 %vm168_vm2, %v2636_v32 }
  0x8b   :  { %2907 = vmatmul.mubr.msk.f32.vlgmr.msra.gmra.mxu1 %vm250_vm4, %v2634_v33  ;;  %v340_v34 = vpop.permute.xlu0 %339  ;;  %2910 = vmatpush3.msk.msra.mxu0 %vm358_vm1, %v350_v14  ;;  %v3164_v14 = vld [vmem:[%s3367_s3 + $0x8] sm:$0xff]   ;;  %vm494_vm1 = vmand %vm492_vm14, %vm493_vm15  ;;  %vm1376_vm4 = vcmask 523264  }
  0x8c   :  { %vm344_vm9 = vcmp.eq.s32.totalorder %v340_v34, %v3331_v25  ;;  %v343_v35 = vpop.permute.xlu1 %342  ;;  %2914 = vmatprep.subr.bf16.mxu0 %v3263_v23  ;;  %2940 = vmatprep.mubr.msk.bf16.mxu1 %vm3265_vm12, %v3263_v23  ;;  %v3424_v34 = vsel %vm488_vm13, 1.0, %v3263_v23 }
  0x8d   :  { %v2642_v36 = vsel %vm344_vm9, 1.0, %v3263_v23  ;;  %vm345_vm10 = vcmp.eq.s32.totalorder %v343_v35, %v3331_v25 }
  0x8e   :  { %v2643_v37 = vsel %vm345_vm10, 1.0, %v3263_v23  ;;  %2911 = vmatprep.mubr.msk.f32.mxu0 %vm351_vm8, %v2642_v36 }
  0x8f   :  { %2912 = vmatmul.mubr.msk.f32.vlgmr.msra.gmra.mxu0 %vm351_vm8, %v2643_v37 }
  0x90   :  { %2918 = vmatprep.mubr.msk.bf16.mxu0 %vm3265_vm12, %v3263_v23  ;;  %2915 = vmatpush3.bf16.msra.mxu0 %v3162_v60 }
  0x91   :  { %2916 = vmatprep.subr.bf16.mxu0 %v3263_v23 }
  0x94   :  { %2917 = vmatpush3.bf16.msra.mxu0 %v3163_v61 }
  0x95   :  { %2922 = vmatprep.subr.bf16.mxu0 %v3263_v23 }
 0x14a   :  { %v2879_v38 = vpop.f32.mrf.mxu0 }
 0x14b   :  { %v2908_v39 = vpop.f32.mrf.mxu1 }
 0x14c   :  { %v241_v40 = vpop.f32.mrf.mxu0  ;;  %v333_v42 = vadd.f32 %v2908_v39, %v2879_v38  ;;  %v2659_v39 = vld [vmem:[%s3420_s27] ss:$0 sm:$0xff] }
 0x14d   :  { %v327_v41 = vpop.f32.mrf.mxu1 }
 0x14e   :  { %v328_v44 = vadd.f32 %v327_v41, %v241_v40 }
 0x14f   :  { %v2913_v43 = vpop.f32.mrf.mxu0 }
 0x150   :  { %v438_v45 = vadd.f32 %v2913_v43, %v333_v42 }
 0x151   :  { %v428_v46 = vpop.f32.mrf.mxu0 }
 0x152   :  { %v437_v47 = vadd.f32 %v428_v46, %v328_v44  ;;  %v445_v48 = vsel %vm441_vm11, %v438_v45, 0.0 }
 0x153   :  { %446 = vadd.xlane.f32.xlu1 %v445_v48  ;;  %v3438_v48 = vsel %vm494_vm1, 1.0, %v3263_v23 }
 0x154   :  { %v442_v49 = vsel %vm441_vm11, %v437_v47, 0.0 }
 0x155   :  { %443 = vadd.xlane.f32.xlu0 %v442_v49 }
 0x1dc   :  { %v447_v50 = vpop.xlane.xlu1 %446 }
 0x1dd   :  { %v450_v51 = vmul.f32 0.03125, %v447_v50 }
 0x1de   :  { %v444_v52 = vpop.xlane.xlu0 %443 }
 0x1df   :  { %v449_v53 = vmul.f32 0.03125, %v444_v52  ;;  %v452_v54 = vsub.f32 %v438_v45, %v450_v51 }
 0x1e1   :  { %v451_v55 = vsub.f32 %v437_v47, %v449_v53  ;;  %v454_v58 = vmul.f32 %v452_v54, %v452_v54 }
 0x1e3   :  { %v453_v56 = vmul.f32 %v451_v55, %v451_v55  ;;  %v458_v59 = vsel %vm441_vm11, %v454_v58, 0.0 }
 0x1e5   :  { %v455_v57 = vsel %vm441_vm11, %v453_v56, 0.0 }
 0x1e6   :  { %456 = vadd.xlane.f32.xlu0 %v455_v57 }
 0x1ea   :  { %459 = vadd.xlane.f32.xlu0 %v458_v59 }
 0x26f   :  { %v457_v62 = vpop.xlane.xlu0 %456 }
 0x270   :  { %v461_v63 = vmul.f32 0.03125, %v457_v62 }
 0x272   :  { %v463_v0 = vadd.f32 1e-12, %v461_v63 }
 0x273   :  { %v460_v1 = vpop.xlane.xlu0 %459 }
 0x274   :  { %3193 = vrsqrt.f32 %v463_v0  ;;  %v462_v2 = vmul.f32 0.03125, %v460_v1 }
 0x276   :  { %v464_v3 = vadd.f32 1e-12, %v462_v2 }
 0x278   :  { %3195 = vrsqrt.f32 %v464_v3 }
 0x281   :  { %v3194_v4 = vpop.eup %3193 }
 0x282   :  { %v467_v5 = vmul.f32 %v3194_v4, %v451_v55 }
 0x284   :  { %v475_v9 = vmul.f32 %v2647_v6, %v467_v5  ;;  %v3469_v5 = vld [vmem:[%s2606_s2] ss:$0 sm:$0xff] }
 0x285   :  { %v3196_v7 = vpop.eup %3195 }
 0x286   :  { %v468_v8 = vmul.f32 %v3196_v7, %v452_v54  ;;  %v3382_v12 = vadd.f32 %v2648_v10, %v475_v9 }
 0x288   :  { %v476_v11 = vmul.f32 %v2647_v6, %v468_v8 }
 0x28a   :  { %v3384_v13 = vadd.f32 %v2648_v10, %v476_v11 }
 0x28c   :  { %v497_v15 = vpack.c.bf16 %v3384_v13, %v3382_v12 }
 0x28e   :  { %2919 = vmatmul.mubr.msk.bf16.vlgmr.msra.gmra.mxu0 %vm441_vm11, %v497_v15 }
 0x28f   :  { %2923 = vmatpush3.bf16.msra.mxu0 %v3164_v14  ;;  %2926 = vmatprep.mubr.msk.bf16.mxu0 %vm3265_vm12, %v3263_v23 }
 0x290   :  { %2924 = vmatprep.subr.bf16.mxu0 %v3263_v23 }
 0x293   :  { %2925 = vmatpush3.bf16.msra.mxu0 %v3165_v16 }
 0x294   :  { %2930 = vmatprep.subr.bf16.mxu0 %v3263_v23 }
 0x296   :  { %2927 = vmatmul.mubr.msk.bf16.vlgmr.msra.gmra.mxu0 %vm441_vm11, %v497_v15 }
 0x297   :  { %2931 = vmatpush3.bf16.msra.mxu0 %v3166_v17  ;;  %2934 = vmatprep.mubr.msk.bf16.mxu0 %vm3265_vm12, %v3263_v23 }
 0x298   :  { %2932 = vmatprep.subr.bf16.mxu0 %v3263_v23 }
 0x29b   :  { %2933 = vmatpush3.bf16.msra.mxu0 %v3167_v18 }
 0x29c   :  { %2944 = vmatprep.subr.bf16.mxu0 %v3263_v23 }
 0x29e   :  { %2935 = vmatmul.mubr.msk.bf16.vlgmr.msra.gmra.mxu0 %vm441_vm11, %v497_v15  ;;  %v3474_v15 = vld [vmem:[%s2606_s2 + $0x1] ss:$0 sm:$0xff]  ;;  %s3560_s2 = sld [smem:[%s3762_s0 + %s3279_s28]]  }
 0x29f   :  { %2946 = vmatprep.mubr.msk.bf16.mxu0 %vm3265_vm12, %v3263_v23 }
 0x34e   :  { %v558_v19 = vpop.f32.mrf.mxu0 }
 0x34f   :  { %v559_v27 = vadd.f32 %v2651_v21, %v558_v19 }
 0x350   :  { %v2920_v20 = vpop.f32.mrf.mxu0 }
 0x351   :  { %v693_v31 = vmul.f32 0.25, %v559_v27 }
 0x352   :  { %v561_v22 = vpop.f32.mrf.mxu0 }
 0x353   :  { %v562_v32 = vadd.f32 %v2651_v21, %v561_v22  ;;  %v697_v40 = vmul.f32 %v3424_v34, %v693_v31  ;;  %v834_v53 = vmul.f32 %v3438_v48, %v693_v31 }
 0x354   :  { %v2921_v24 = vpop.f32.mrf.mxu0 }
 0x355   :  { %v694_v41 = vmul.f32 0.25, %v562_v32  ;;  %v699_v47 = vpack.c.bf16 %v697_v40, %v697_v40  ;;  %v836_v57 = vpack.c.bf16 %v834_v53, %v834_v53 }
 0x356   :  { %v622_v28 = vpop.f32.mrf.mxu0 }
 0x357   :  { %v623_v29 = vadd.f32 %v2655_v26, %v622_v28  ;;  %v698_v25 = vmul.f32 %v3424_v34, %v694_v41  ;;  %v835_v58 = vmul.f32 %v3438_v48, %v694_v41 }
 0x358   :  { %v2928_v30 = vpop.f32.mrf.mxu0 }
 0x359   :  { %v695_v33 = vpack.c.bf16 %v623_v29, %v623_v29  ;;  %v700_v54 = vpack.c.bf16 %v698_v25, %v698_v25  ;;  %v837_v61 = vpack.c.bf16 %v835_v58, %v835_v58 }
 0x35a   :  { %v625_v35 = vpop.f32.mrf.mxu0 }
 0x35b   :  { %v717_v36 = vsel %vm441_vm11, %v695_v33, 0  ;;  %v626_v37 = vadd.f32 %v2655_v26, %v625_v35 }
 0x35c   :  { %v2929_v38 = vpop.f32.mrf.mxu0  ;;  %2939 = vmatpush3.bf16.xpose.msra.mxu1 %v717_v36 }
 0x35d   :  { %v696_v42 = vpack.c.bf16 %v626_v37, %v626_v37  ;;  %2950 = vmatprep.subr.bf16.mxu1 %v3263_v23 }
 0x35e   :  { %v686_v43 = vpop.f32.mrf.mxu0 }
 0x35f   :  { %v763_v44 = vsel %vm441_vm11, %v696_v42, 0  ;;  %v3433_v45 = vadd.f32 %v2659_v39, %v686_v43 }
 0x360   :  { %v2936_v46 = vpop.f32.mrf.mxu0  ;;  %2945 = vmatpush3.bf16.xpose.msra.mxu0 %v763_v44 }
 0x361   :  { %2956 = vmatprep.subr.bf16.mxu0 %v3263_v23  ;;  %v946_v50 = vmul.f32 %v3438_v48, %v3433_v45 }
 0x362   :  { %v689_v49 = vpop.f32.mrf.mxu0 }
 0x363   :  { %v3442_v51 = vadd.f32 %v2659_v39, %v689_v49  ;;  %2941 = vmatmul.mubr.msk.bf16.vlgmr.msra.gmra.mxu1 %vm441_vm11, %v699_v47  ;;  %v948_v55 = vpack.c.bf16 %v946_v50, %v946_v50 }
 0x364   :  { %v2937_v52 = vpop.f32.mrf.mxu0  ;;  %2951 = vmatpush3.bf16.xpose.msra.mxu1 %v717_v36  ;;  %2952 = vmatprep.mubr.msk.bf16.mxu1 %vm3265_vm12, %v3263_v23 }
 0x365   :  { %2962 = vmatprep.subr.bf16.mxu1 %v3263_v23  ;;  %v947_v56 = vmul.f32 %v3438_v48, %v3442_v51  ;;  %v956_v60 = vsel %vm257_vm0, %v948_v55, 0 }
 0x367   :  { %2947 = vmatmul.mubr.msk.bf16.vlgmr.msra.gmra.mxu0 %vm441_vm11, %v700_v54  ;;  %v949_v59 = vpack.c.bf16 %v947_v56, %v947_v56  ;;  %v828_v56 = vmul.f32 %v3424_v34, %v3433_v45 }
 0x368   :  { %2957 = vmatpush3.bf16.xpose.msra.mxu0 %v763_v44  ;;  %2958 = vmatprep.mubr.msk.bf16.mxu0 %vm3265_vm12, %v3263_v23 }
 0x369   :  { %2968 = vmatprep.subr.bf16.mxu0 %v3263_v23  ;;  %v1002_v62 = vsel %vm257_vm0, %v949_v59, 0  ;;  %v830_v58 = vpack.c.bf16 %v828_v56, %v828_v56 }
 0x36b   :  { %2953 = vmatmul.mubr.msk.bf16.vlgmr.msra.gmra.mxu1 %vm441_vm11, %v836_v57 }
 0x36c   :  { %2963 = vmatpush3.bf16.msra.mxu1 %v956_v60  ;;  %2964 = vmatprep.mubr.msk.bf16.mxu1 %vm3265_vm12, %v3263_v23  ;;  %v829_v60 = vmul.f32 %v3424_v34, %v3442_v51 }
 0x36d   :  { %2974 = vmatprep.subr.bf16.mxu1 %v3263_v23 }
 0x36f   :  { %2959 = vmatmul.mubr.msk.bf16.vlgmr.msra.gmra.mxu0 %vm441_vm11, %v837_v61 }
 0x370   :  { %2969 = vmatpush3.bf16.msra.mxu0 %v1002_v62  ;;  %2970 = vmatprep.mubr.msk.bf16.mxu0 %vm3265_vm12, %v3263_v23 }
 0x371   :  { %2980 = vmatprep.subr.bf16.mxu0 %v3263_v23 }
 0x423   :  { %v753_v63 = vpop.f32.mrf.mxu1 }
 0x424   :  { %v754_v11 = vadd.f32 %v3469_v5, %v753_v63 }
 0x425   :  { %v2942_v0 = vpop.f32.mrf.mxu1 }
 0x426   :  { %v806_v22 = vsel %vm805_vm3, %v754_v11, -inf  ;;  %v1048_v0 = vsel %vm257_vm0, %v830_v58, 0  ;;  %v3171_v58 = vld [vmem:[%s3533_s16] sm:$0xff]  }
 0x427   :  { %v756_v1 = vpop.f32.mrf.mxu1  ;;  %v799_v2 = vpop.f32.mrf.mxu0 }
 0x428   :  { %v800_v21 = vadd.f32 %v3474_v15, %v799_v2  ;;  %v831_v1 = vpack.c.bf16 %v829_v60, %v829_v60 }
 0x429   :  { %v2943_v3 = vpop.f32.mrf.mxu1  ;;  %v2948_v4 = vpop.f32.mrf.mxu0 }
 0x42a   :  { %v809_v28 = vsel %vm805_vm3, %v800_v21, -inf  ;;  %v1094_v51 = vsel %vm257_vm0, %v831_v1, 0 }
 0x42b   :  { %v802_v6 = vpop.f32.mrf.mxu0  ;;  %v875_v7 = vpop.f32.mrf.mxu1 }
 0x42c   :  { %v876_v8 = vadd.f32 %v3469_v5, %v875_v7 }
 0x42d   :  { %v2949_v9 = vpop.f32.mrf.mxu0  ;;  %v2954_v10 = vpop.f32.mrf.mxu1 }
 0x42e   :  { %v924_v14 = vsel %vm805_vm3, %v876_v8, -inf  ;;  %v3168_v9 = vld [vmem:[%s3508_s8 + $0x8] sm:$0xff]   ;;  %v3169_v10 = vld [vmem:[%s3508_s8] sm:$0xff]  }
 0x42f   :  { %925 = vmax.xlane.f32.xlu1 %v924_v14  ;;  %v878_v16 = vpop.f32.mrf.mxu1  ;;  %v918_v17 = vpop.f32.mrf.mxu0 }
 0x430   :  { %v919_v18 = vadd.f32 %v3474_v15, %v918_v17 }
 0x431   :  { %v2955_v19 = vpop.f32.mrf.mxu1  ;;  %v2960_v20 = vpop.f32.mrf.mxu0 }
 0x432   :  { %v927_v24 = vsel %vm805_vm3, %v919_v18, -inf }
 0x433   :  { %807 = vmax.xlane.f32.xlu1 %v806_v22  ;;  %928 = vmax.xlane.f32.xlu0 %v927_v24  ;;  %v921_v26 = vpop.f32.mrf.mxu0 }
 0x435   :  { %v2961_v27 = vpop.f32.mrf.mxu0 }
 0x437   :  { %810 = vmax.xlane.f32.xlu0 %v809_v28 }
 0x4b8   :  { %v926_v29 = vpop.xlane.xlu1 %925 }
 0x4b9   :  { %v930_v30 = vsub.f32 %v876_v8, %v926_v29 }
 0x4bb   :  { %v932_v31 = vmul.f32 1.442695, %v930_v30 }
 0x4bc   :  { %v808_v32 = vpop.xlane.xlu1 %807  ;;  %v929_v33 = vpop.xlane.xlu0 %928 }
 0x4bd   :  { %3197 = vpow2.f32 %v932_v31  ;;  %v812_v35 = vsub.f32 %v754_v11, %v808_v32  ;;  %v931_v36 = vsub.f32 %v919_v18, %v929_v33 }
 0x4bf   :  { %v814_v37 = vmul.f32 1.442695, %v812_v35  ;;  %v934_v38 = vmul.f32 1.442695, %v931_v36  ;;  %v2673_v36 = vld [vmem:[%s3521_s12] ss:$0 sm:$0xff] }
 0x4c0   :  { %v811_v39 = vpop.xlane.xlu0 %810 }
 0x4c1   :  { %3199 = vpow2.f32 %v814_v37  ;;  %v813_v40 = vsub.f32 %v800_v21, %v811_v39 }
 0x4c2   :  { %3201 = vpow2.f32 %v934_v38 }
 0x4c3   :  { %v816_v41 = vmul.f32 1.442695, %v813_v40 }
 0x4c5   :  { %3203 = vpow2.f32 %v816_v41 }
 0x4ca   :  { %v3198_v42 = vpop.eup %3197 }
 0x4cb   :  { %v936_v43 = vsel %vm805_vm3, %v3198_v42, 0.0 }
 0x4cc   :  { %937 = vadd.xlane.f32.xlu1 %v936_v43 }
 0x4ce   :  { %v3200_v44 = vpop.eup %3199 }
 0x4cf   :  { %v3202_v46 = vpop.eup %3201  ;;  %v818_v47 = vsel %vm805_vm3, %v3200_v44, 0.0 }
 0x4d0   :  { %819 = vadd.xlane.f32.xlu1 %v818_v47  ;;  %v939_v25 = vsel %vm805_vm3, %v3202_v46, 0.0 }
 0x4d1   :  { %940 = vadd.xlane.f32.xlu0 %v939_v25 }
 0x4d2   :  { %v3204_v49 = vpop.eup %3203 }
 0x4d3   :  { %v821_v50 = vsel %vm805_vm3, %v3204_v49, 0.0 }
 0x4d5   :  { %822 = vadd.xlane.f32.xlu0 %v821_v50 }
 0x555   :  { %v938_v52 = vpop.xlane.xlu1 %937 }
 0x556   :  { %3205 = vrcp.f32 %v938_v52 }
 0x559   :  { %v820_v53 = vpop.xlane.xlu1 %819 }
 0x55a   :  { %3207 = vrcp.f32 %v820_v53  ;;  %v941_v54 = vpop.xlane.xlu0 %940 }
 0x55b   :  { %3209 = vrcp.f32 %v941_v54 }
 0x55e   :  { %v823_v55 = vpop.xlane.xlu0 %822 }
 0x55f   :  { %3211 = vrcp.f32 %v823_v55 }
 0x563   :  { %v3206_v57 = vpop.eup %3205 }
 0x564   :  { %v944_v59 = vmul.f32 %v3206_v57, %v3198_v42 }
 0x566   :  { %v950_v61 = vpack.c.bf16 %v944_v59, %v944_v59 }
 0x567   :  { %v3208_v62 = vpop.eup %3207 }
 0x568   :  { %v3210_v63 = vpop.eup %3209  ;;  %2965 = vmatmul.mubr.msk.bf16.vlgmr.msra.gmra.mxu1 %vm805_vm3, %v950_v61  ;;  %v826_v45 = vmul.f32 %v3208_v62, %v3200_v44 }
 0x569   :  { %2975 = vmatpush3.bf16.msra.mxu1 %v1048_v0  ;;  %v945_v2 = vmul.f32 %v3210_v63, %v3202_v46  ;;  %2976 = vmatprep.mubr.msk.bf16.mxu1 %vm3265_vm12, %v3263_v23 }
 0x56a   :  { %2986 = vmatprep.subr.bf16.mxu1 %v3263_v23  ;;  %v832_v6 = vpack.c.bf16 %v826_v45, %v826_v45  ;;  %v2677_v45 = vld [vmem:[%s3542_s21] ss:$0 sm:$0xff] }
 0x56b   :  { %v951_v3 = vpack.c.bf16 %v945_v2, %v945_v2 }
 0x56c   :  { %v3212_v4 = vpop.eup %3211 }
 0x56d   :  { %2971 = vmatmul.mubr.msk.bf16.vlgmr.msra.gmra.mxu0 %vm805_vm3, %v951_v3  ;;  %v827_v7 = vmul.f32 %v3212_v4, %v3204_v49 }
 0x56e   :  { %2981 = vmatpush3.bf16.msra.mxu0 %v1094_v51  ;;  %2982 = vmatprep.mubr.msk.bf16.mxu0 %vm3265_vm12, %v3263_v23 }
 0x56f   :  { %2994 = vmatprep.subr.bf16.mxu0 %v3263_v23  ;;  %v833_v8 = vpack.c.bf16 %v827_v7, %v827_v7 }
 0x570   :  { %2977 = vmatmul.mubr.msk.bf16.vlgmr.msra.gmra.mxu1 %vm805_vm3, %v832_v6  ;;  %v2678_v6 = vld [vmem:[%s3547_s26] ss:$0 sm:$0xff] }
 0x571   :  { %2990 = vmatprep.mubr.msk.bf16.mxu1 %vm3265_vm12, %v3263_v23  ;;  %2987 = vmatpush3.bf16.msra.mxu1 %v3168_v9 }
 0x572   :  { %2988 = vmatprep.subr.bf16.mxu1 %v3263_v23 }
 0x575   :  { %2983 = vmatmul.mubr.msk.bf16.vlgmr.msra.gmra.mxu0 %vm805_vm3, %v833_v8  ;;  %2989 = vmatpush3.bf16.msra.mxu1 %v3169_v10 }
 0x576   :  { %2998 = vmatprep.mubr.msk.bf16.mxu0 %vm3265_vm12, %v3263_v23  ;;  %3002 = vmatprep.subr.bf16.mxu1 %v3263_v23 }
 0x628   :  { %v992_v11 = vpop.f32.mrf.mxu1 }
 0x62a   :  { %v2966_v14 = vpop.f32.mrf.mxu1 }
 0x62b   :  { %v3173_v14 = vld [vmem:[%s3560_s2 + $0x10] sm:$0xff]  }
 0x62c   :  { %v995_v16 = vpop.f32.mrf.mxu1 }
 0x62d   :  { %v1038_v17 = vpop.f32.mrf.mxu0  ;;  %v3174_v16 = vld [vmem:[%s3560_s2 + $0x8] sm:$0xff]  }
 0x62e   :  { %v2967_v18 = vpop.f32.mrf.mxu1 }
 0x62f   :  { %v2972_v19 = vpop.f32.mrf.mxu0  ;;  %v2679_v18 = vld [vmem:[%s3573_s10] ss:$0 sm:$0xff] }
 0x630   :  { %v1084_v20 = vpop.f32.mrf.mxu1 }
 0x631   :  { %v1041_v21 = vpop.f32.mrf.mxu0  ;;  %v1085_v28 = vadd.f32 %v1084_v20, %v992_v11  ;;  %v3172_v11 = vld [vmem:[%s3560_s2 + $0x18] sm:$0xff]  }
 0x632   :  { %v2978_v22 = vpop.f32.mrf.mxu1 }
 0x633   :  { %v2973_v24 = vpop.f32.mrf.mxu0 }
 0x634   :  { %v1087_v26 = vpop.f32.mrf.mxu1 }
 0x635   :  { %v1130_v27 = vpop.f32.mrf.mxu0 }
 0x636   :  { %v1131_v29 = vadd.f32 %v1130_v27, %v1038_v17  ;;  %v2979_v30 = vpop.f32.mrf.mxu1  ;;  %v3175_v17 = vld [vmem:[%s3560_s2] sm:$0xff]  }
 0x637   :  { %v2984_v31 = vpop.f32.mrf.mxu0 }
 0x638   :  { %v1136_v32 = vpack.c.bf16 %v1131_v29, %v1085_v28 }
 0x639   :  { %v1133_v33 = vpop.f32.mrf.mxu0 }
 0x63a   :  { %2991 = vmatmul.mubr.msk.bf16.vlgmr.msra.gmra.mxu1 %vm441_vm11, %v1136_v32 }
 0x63b   :  { %v2985_v35 = vpop.f32.mrf.mxu0  ;;  %3010 = vmatprep.mubr.msk.bf16.mxu1 %vm3265_vm12, %v3263_v23  ;;  %3003 = vmatpush3.bf16.msra.mxu1 %v3172_v11 }
 0x63c   :  { %3004 = vmatprep.subr.bf16.mxu1 %v3263_v23 }
 0x63f   :  { %3005 = vmatpush3.bf16.msra.mxu1 %v3173_v14 }
 0x640   :  { %3006 = vmatprep.subr.bf16.mxu1 %v3263_v23 }
 0x643   :  { %3007 = vmatpush3.bf16.msra.mxu1 %v3174_v16 }
 0x644   :  { %3008 = vmatprep.subr.bf16.mxu1 %v3263_v23 }
 0x647   :  { %3009 = vmatpush3.bf16.msra.mxu1 %v3175_v17 }
 0x648   :  { %3030 = vmatprep.subr.bf16.mxu1 %v3263_v23 }
 0x6fa   :  { %v1197_v37 = vpop.f32.mrf.mxu1 }
 0x6fb   :  { %v1198_v38 = vadd.f32 %v2673_v36, %v1197_v37 }
 0x6fc   :  { %v2992_v39 = vpop.f32.mrf.mxu1 }
 0x6fd   :  { %v1204_v40 = vadd.f32 %v1198_v38, %v3382_v12 }
 0x6fe   :  { %v1200_v41 = vpop.f32.mrf.mxu1 }
 0x6ff   :  { %v1201_v42 = vadd.f32 %v2673_v36, %v1200_v41  ;;  %v1208_v43 = vsel %vm441_vm11, %v1204_v40, 0.0 }
 0x700   :  { %1209 = vadd.xlane.f32.xlu1 %v1208_v43  ;;  %v2993_v44 = vpop.f32.mrf.mxu1 }
 0x701   :  { %v1205_v46 = vadd.f32 %v1201_v42, %v3384_v13  ;;  %v3170_v13 = vld [vmem:[%s3533_s16 + $0x8] sm:$0xff]  }
 0x702   :  { %2995 = vmatpush3.bf16.msra.mxu0 %v3170_v13 }
 0x703   :  { %v1211_v47 = vsel %vm441_vm11, %v1205_v46, 0.0  ;;  %2996 = vmatprep.subr.bf16.mxu0 %v3263_v23 }
 0x704   :  { %1212 = vadd.xlane.f32.xlu0 %v1211_v47 }
 0x706   :  { %2997 = vmatpush3.bf16.msra.mxu0 %v3171_v58 }
 0x707   :  { %3014 = vmatprep.subr.bf16.mxu0 %v3263_v23 }
 0x789   :  { %v1210_v25 = vpop.xlane.xlu1 %1209 }
 0x78a   :  { %v1214_v49 = vmul.f32 0.03125, %v1210_v25  ;;  %v2683_v25 = vld [vmem:[%s3582_s15] ss:$0 sm:$0xff] }
 0x78c   :  { %v1216_v50 = vsub.f32 %v1204_v40, %v1214_v49 }
 0x78d   :  { %v1213_v52 = vpop.xlane.xlu0 %1212 }
 0x78e   :  { %v1215_v53 = vmul.f32 0.03125, %v1213_v52  ;;  %v1218_v54 = vmul.f32 %v1216_v50, %v1216_v50 }
 0x790   :  { %v1217_v55 = vsub.f32 %v1205_v46, %v1215_v53  ;;  %v1220_v12 = vsel %vm441_vm11, %v1218_v54, 0.0 }
 0x791   :  { %1221 = vadd.xlane.f32.xlu1 %v1220_v12 }
 0x792   :  { %v1219_v56 = vmul.f32 %v1217_v55, %v1217_v55 }
 0x794   :  { %v1223_v57 = vsel %vm441_vm11, %v1219_v56, 0.0 }
 0x795   :  { %1224 = vadd.xlane.f32.xlu0 %v1223_v57 }
 0x81a   :  { %v1222_v59 = vpop.xlane.xlu1 %1221 }
 0x81b   :  { %v1226_v60 = vmul.f32 0.03125, %v1222_v59 }
 0x81d   :  { %v1228_v61 = vadd.f32 1e-12, %v1226_v60 }
 0x81e   :  { %v1225_v62 = vpop.xlane.xlu0 %1224 }
 0x81f   :  { %3213 = vrsqrt.f32 %v1228_v61  ;;  %v1227_v63 = vmul.f32 0.03125, %v1225_v62 }
 0x821   :  { %v1229_v0 = vadd.f32 1e-12, %v1227_v63 }
 0x823   :  { %3215 = vrsqrt.f32 %v1229_v0 }
 0x82c   :  { %v3214_v1 = vpop.eup %3213 }
 0x82d   :  { %v1232_v2 = vmul.f32 %v3214_v1, %v1216_v50 }
 0x82f   :  { %v1240_v51 = vmul.f32 %v2677_v45, %v1232_v2 }
 0x830   :  { %v3216_v3 = vpop.eup %3215 }
 0x831   :  { %v1233_v4 = vmul.f32 %v3216_v3, %v1217_v55  ;;  %v1248_v8 = vadd.f32 %v2678_v6, %v1240_v51  ;;  %v3176_v3 = vld [vmem:[%s3356_s29 + $0x18] sm:$0xff]   ;;  %v3178_v51 = vld [vmem:[%s3356_s29 + $0x10] sm:$0xff]   ;;  %s3282_s29 = smov 23  }
 0x832   :  { %s3601_s18 = sld [smem:[%s3762_s0 + %s3282_s29]]  }
 0x833   :  { %v1241_v7 = vmul.f32 %v2677_v45, %v1233_v4  ;;  %v3177_v4 = vld [vmem:[%s3374_s7 + $0x18] sm:$0xff]  }
 0x835   :  { %v3551_v9 = vadd.f32 %v2678_v6, %v1241_v7  ;;  %v3179_v6 = vld [vmem:[%s3374_s7 + $0x10] sm:$0xff]  }
 0x837   :  { %v1250_v10 = vpack.c.bf16 %v3551_v9, %v1248_v8 }
 0x839   :  { %2999 = vmatmul.mubr.msk.bf16.vlgmr.msra.gmra.mxu0 %vm441_vm11, %v1250_v10 }
 0x83a   :  { %3018 = vmatprep.mubr.msk.bf16.mxu0 %vm3265_vm12, %v3263_v23  ;;  %3015 = vmatpush3.bf16.msra.mxu0 %v3176_v3 }
 0x83b   :  { %3016 = vmatprep.subr.bf16.mxu0 %v3263_v23 }
 0x83e   :  { %3017 = vmatpush3.bf16.msra.mxu0 %v3178_v51 }
 0x83f   :  { %3022 = vmatprep.subr.bf16.mxu0 %v3263_v23 }
 0x8f9   :  { %v1311_v19 = vpop.f32.mrf.mxu0 }
 0x8fa   :  { %v1312_v20 = vadd.f32 %v2679_v18, %v1311_v19 }
 0x8fb   :  { %v3000_v21 = vpop.f32.mrf.mxu0 }
 0x8fc   :  { %v1320_v22 = vmul.f32 0.044715, %v1312_v20  ;;  %v1318_v41 = vmul.f32 0.5, %v1312_v20 }
 0x8fd   :  { %v1314_v24 = vpop.f32.mrf.mxu0 }
 0x8fe   :  { %v1322_v26 = vmul.f32 %v1320_v22, %v1312_v20  ;;  %v1315_v27 = vadd.f32 %v2679_v18, %v1314_v24  ;;  %v2689_v18 = vld [vmem:[%s3601_s18] ss:$0 sm:$0xff] }
 0x8ff   :  { %v3001_v28 = vpop.f32.mrf.mxu0  ;;  %v2690_v22 = vld [vmem:[%s3606_s25] ss:$0 sm:$0xff] }
 0x900   :  { %v1324_v29 = vmul.f32 %v1322_v26, %v1312_v20  ;;  %v1321_v30 = vmul.f32 0.044715, %v1315_v27  ;;  %v1319_v42 = vmul.f32 0.5, %v1315_v27  ;;  %v3180_v28 = vld [vmem:[%s3367_s3 + $0x18] sm:$0xff]  }
 0x902   :  { %v1326_v31 = vadd.f32 %v1324_v29, %v1312_v20  ;;  %v1323_v32 = vmul.f32 %v1321_v30, %v1315_v27  ;;  %v3181_v30 = vld [vmem:[%s3367_s3 + $0x10] sm:$0xff]   ;;  %s3284_s3 = smov 25  }
 0x904   :  { %v1328_v33 = vmul.f32 0.7978846, %v1326_v31  ;;  %v1325_v35 = vmul.f32 %v1323_v32, %v1315_v27 }
 0x906   :  { %3217 = vtanh.f32 %v1328_v33  ;;  %v1327_v36 = vadd.f32 %v1325_v35, %v1315_v27 }
 0x908   :  { %v1329_v37 = vmul.f32 0.7978846, %v1327_v36  ;;  %v2696_v36 = vld [vmem:[%s3408_s19 + $0x1] ss:$0 sm:$0xff] }
 0x90a   :  { %3219 = vtanh.f32 %v1329_v37 }
 0x913   :  { %v3218_v38 = vpop.eup %3217 }
 0x914   :  { %v1332_v39 = vadd.f32 1.0, %v3218_v38 }
 0x916   :  { %v1334_v44 = vmul.f32 %v1332_v39, %v1318_v41  ;;  %v2705_v41 = vld [vmem:[%s3413_s23 + $0x1] ss:$0 sm:$0xff] }
 0x917   :  { %v3220_v40 = vpop.eup %3219 }
 0x918   :  { %v1333_v43 = vadd.f32 1.0, %v3220_v40 }
 0x91a   :  { %v1335_v46 = vmul.f32 %v1333_v43, %v1319_v42 }
 0x91c   :  { %v1336_v47 = vpack.c.bf16 %v1335_v46, %v1334_v44 }
 0x91e   :  { %3011 = vmatmul.mubr.msk.bf16.vlgmr.msra.gmra.mxu1 %vm1376_vm4, %v1336_v47 }
 0x91f   :  { %3034 = vmatprep.mubr.msk.bf16.mxu1 %vm3265_vm12, %v3263_v23  ;;  %3031 = vmatpush3.bf16.msra.mxu1 %v3177_v4 }
 0x920   :  { %3032 = vmatprep.subr.bf16.mxu1 %v3263_v23 }
 0x923   :  { %3033 = vmatpush3.bf16.msra.mxu1 %v3179_v6 }
 0x924   :  { %3044 = vmatprep.subr.bf16.mxu1 %v3263_v23 }
 0x9de   :  { %v1414_v49 = vpop.f32.mrf.mxu1 }
 0x9df   :  { %v1415_v50 = vadd.f32 %v2683_v25, %v1414_v49 }
 0x9e0   :  { %v3012_v52 = vpop.f32.mrf.mxu1 }
 0x9e1   :  { %v1421_v53 = vadd.f32 %v1415_v50, %v1248_v8 }
 0x9e2   :  { %v1417_v54 = vpop.f32.mrf.mxu1 }
 0x9e3   :  { %v1418_v55 = vadd.f32 %v2683_v25, %v1417_v54  ;;  %v1425_v12 = vsel %vm441_vm11, %v1421_v53, 0.0  ;;  %v2714_v54 = vld [vmem:[%s3420_s27 + $0x1] ss:$0 sm:$0xff]  ;;  %s2628_s27 = sld [smem:[%s3762_s0 + %s3284_s3]]  }
 0x9e4   :  { %1426 = vadd.xlane.f32.xlu1 %v1425_v12  ;;  %v3013_v56 = vpop.f32.mrf.mxu1 }
 0x9e5   :  { %v1422_v57 = vadd.f32 %v1418_v55, %v3551_v9 }
 0x9e7   :  { %v1428_v13 = vsel %vm441_vm11, %v1422_v57, 0.0 }
 0x9e8   :  { %1429 = vadd.xlane.f32.xlu0 %v1428_v13 }
 0xa6d   :  { %v1427_v58 = vpop.xlane.xlu1 %1426 }
 0xa6e   :  { %v1431_v59 = vmul.f32 0.03125, %v1427_v58 }
 0xa70   :  { %v1433_v60 = vsub.f32 %v1421_v53, %v1431_v59 }
 0xa71   :  { %v1430_v61 = vpop.xlane.xlu0 %1429 }
 0xa72   :  { %v1432_v62 = vmul.f32 0.03125, %v1430_v61  ;;  %v1435_v63 = vmul.f32 %v1433_v60, %v1433_v60 }
 0xa74   :  { %v1434_v0 = vsub.f32 %v1422_v57, %v1432_v62  ;;  %v1437_v1 = vsel %vm441_vm11, %v1435_v63, 0.0 }
 0xa75   :  { %1438 = vadd.xlane.f32.xlu1 %v1437_v1 }
 0xa76   :  { %v1436_v2 = vmul.f32 %v1434_v0, %v1434_v0 }
 0xa78   :  { %v1440_v45 = vsel %vm441_vm11, %v1436_v2, 0.0 }
 0xa79   :  { %1441 = vadd.xlane.f32.xlu0 %v1440_v45 }
 0xafe   :  { %v1439_v7 = vpop.xlane.xlu1 %1438 }
 0xaff   :  { %v1443_v8 = vmul.f32 0.03125, %v1439_v7 }
 0xb01   :  { %v1445_v9 = vadd.f32 1e-12, %v1443_v8 }
 0xb02   :  { %v1442_v10 = vpop.xlane.xlu0 %1441 }
 0xb03   :  { %3221 = vrsqrt.f32 %v1445_v9  ;;  %v1444_v11 = vmul.f32 0.03125, %v1442_v10 }
 0xb05   :  { %v1446_v14 = vadd.f32 1e-12, %v1444_v11 }
 0xb07   :  { %3223 = vrsqrt.f32 %v1446_v14 }
 0xb10   :  { %v3222_v16 = vpop.eup %3221 }
 0xb11   :  { %v1449_v17 = vmul.f32 %v3222_v16, %v1433_v60 }
 0xb13   :  { %v1457_v21 = vmul.f32 %v2689_v18, %v1449_v17 }
 0xb14   :  { %v3224_v19 = vpop.eup %3223 }
 0xb15   :  { %v1450_v20 = vmul.f32 %v3224_v19, %v1434_v0  ;;  %v3610_v26 = vadd.f32 %v2690_v22, %v1457_v21 }
 0xb17   :  { %v1458_v24 = vmul.f32 %v2689_v18, %v1450_v20 }
 0xb19   :  { %v3612_v27 = vadd.f32 %v2690_v22, %v1458_v24 }
 0xb1b   :  { %v1467_v29 = vpack.c.bf16 %v3612_v27, %v3610_v26 }
 0xb1d   :  { %3019 = vmatmul.mubr.msk.bf16.vlgmr.msra.gmra.mxu0 %vm441_vm11, %v1467_v29  ;;  %3035 = vmatmul.mubr.msk.bf16.vlgmr.msra.gmra.mxu1 %vm441_vm11, %v1467_v29 }
 0xb1e   :  { %3023 = vmatpush3.bf16.msra.mxu0 %v3180_v28  ;;  %3026 = vmatprep.mubr.msk.bf16.mxu0 %vm3265_vm12, %v3263_v23 }
 0xb1f   :  { %3024 = vmatprep.subr.bf16.mxu0 %v3263_v23  ;;  %3046 = vmatprep.mubr.msk.bf16.mxu1 %vm3265_vm12, %v3263_v23 }
 0xb22   :  { %3025 = vmatpush3.bf16.msra.mxu0 %v3181_v30 }
 0xb23   :  { %3038 = vmatprep.subr.bf16.mxu0 %v3263_v23 }
 0xb25   :  { %3027 = vmatmul.mubr.msk.bf16.vlgmr.msra.gmra.mxu0 %vm441_vm11, %v1467_v29 }
 0xb26   :  { %3040 = vmatprep.mubr.msk.bf16.mxu0 %vm3265_vm12, %v3263_v23 }
 0xbdd   :  { %v1530_v31 = vpop.f32.mrf.mxu0  ;;  %v1662_v32 = vpop.f32.mrf.mxu1 }
 0xbde   :  { %v1531_v42 = vadd.f32 %v2696_v36, %v1530_v31  ;;  %v3635_v13 = vadd.f32 %v2714_v54, %v1662_v32 }
 0xbdf   :  { %v3020_v33 = vpop.f32.mrf.mxu0  ;;  %v3036_v35 = vpop.f32.mrf.mxu1 }
 0xbe0   :  { %v1669_v47 = vmul.f32 0.25, %v1531_v42  ;;  %v1909_v61 = vmul.f32 %v3438_v48, %v3635_v13 }
 0xbe1   :  { %v1533_v37 = vpop.f32.mrf.mxu0  ;;  %v1665_v38 = vpop.f32.mrf.mxu1 }
 0xbe2   :  { %v1534_v25 = vadd.f32 %v2696_v36, %v1533_v37  ;;  %v1673_v12 = vmul.f32 %v3424_v34, %v1669_v47  ;;  %v3642_v62 = vadd.f32 %v2714_v54, %v1665_v38  ;;  %v1797_v63 = vmul.f32 %v3438_v48, %v1669_v47 }
 0xbe3   :  { %v3021_v39 = vpop.f32.mrf.mxu0  ;;  %v3037_v40 = vpop.f32.mrf.mxu1  ;;  %v1911_v1 = vpack.c.bf16 %v1909_v61, %v1909_v61 }
 0xbe4   :  { %v1670_v56 = vmul.f32 0.25, %v1534_v25  ;;  %v1675_v59 = vpack.c.bf16 %v1673_v12, %v1673_v12  ;;  %v1910_v2 = vmul.f32 %v3438_v48, %v3642_v62  ;;  %v1799_v45 = vpack.c.bf16 %v1797_v63, %v1797_v63 }
 0xbe5   :  { %v1596_v43 = vpop.f32.mrf.mxu0  ;;  %v1919_v51 = vsel %vm257_vm0, %v1911_v1, 0  ;;  %v1791_v63 = vmul.f32 %v3424_v34, %v3635_v13 }
 0xbe6   :  { %v1597_v44 = vadd.f32 %v2705_v41, %v1596_v43  ;;  %v1674_v60 = vmul.f32 %v3424_v34, %v1670_v56  ;;  %v1798_v3 = vmul.f32 %v3438_v48, %v1670_v56  ;;  %v1912_v4 = vpack.c.bf16 %v1910_v2, %v1910_v2 }
 0xbe7   :  { %v3028_v46 = vpop.f32.mrf.mxu0  ;;  %v1793_v1 = vpack.c.bf16 %v1791_v63, %v1791_v63  ;;  %v1792_v2 = vmul.f32 %v3424_v34, %v3642_v62 }
 0xbe8   :  { %v1671_v49 = vpack.c.bf16 %v1597_v44, %v1597_v44  ;;  %v1676_v0 = vpack.c.bf16 %v1674_v60, %v1674_v60  ;;  %v1800_v6 = vpack.c.bf16 %v1798_v3, %v1798_v3  ;;  %v1965_v7 = vsel %vm257_vm0, %v1912_v4, 0 }
 0xbe9   :  { %v1599_v50 = vpop.f32.mrf.mxu0 }
 0xbea   :  { %v1681_v52 = vsel %vm441_vm11, %v1671_v49, 0  ;;  %v1600_v53 = vadd.f32 %v2705_v41, %v1599_v50 }
 0xbeb   :  { %v3029_v55 = vpop.f32.mrf.mxu0  ;;  %3039 = vmatpush3.bf16.xpose.msra.mxu0 %v1681_v52 }
 0xbec   :  { %v1672_v57 = vpack.c.bf16 %v1600_v53, %v1600_v53  ;;  %3050 = vmatprep.subr.bf16.mxu0 %v3263_v23 }
 0xbee   :  { %v1727_v58 = vsel %vm441_vm11, %v1672_v57, 0 }
 0xbef   :  { %3045 = vmatpush3.bf16.xpose.msra.mxu1 %v1727_v58 }
 0xbf0   :  { %3056 = vmatprep.subr.bf16.mxu1 %v3263_v23 }
 0xbf2   :  { %3041 = vmatmul.mubr.msk.bf16.vlgmr.msra.gmra.mxu0 %vm441_vm11, %v1675_v59 }
 0xbf3   :  { %3051 = vmatpush3.bf16.xpose.msra.mxu0 %v1681_v52  ;;  %3052 = vmatprep.mubr.msk.bf16.mxu0 %vm3265_vm12, %v3263_v23 }
 0xbf4   :  { %3062 = vmatprep.subr.bf16.mxu0 %v3263_v23 }
 0xbf6   :  { %3047 = vmatmul.mubr.msk.bf16.vlgmr.msra.gmra.mxu1 %vm441_vm11, %v1676_v0 }
 0xbf7   :  { %3057 = vmatpush3.bf16.xpose.msra.mxu1 %v1727_v58  ;;  %3058 = vmatprep.mubr.msk.bf16.mxu1 %vm3265_vm12, %v3263_v23 }
 0xbf8   :  { %3068 = vmatprep.subr.bf16.mxu1 %v3263_v23 }
 0xbfa   :  { %3053 = vmatmul.mubr.msk.bf16.vlgmr.msra.gmra.mxu0 %vm441_vm11, %v1799_v45 }
 0xbfb   :  { %3063 = vmatpush3.bf16.msra.mxu0 %v1919_v51  ;;  %3064 = vmatprep.mubr.msk.bf16.mxu0 %vm3265_vm12, %v3263_v23 }
 0xbfc   :  { %3074 = vmatprep.subr.bf16.mxu0 %v3263_v23 }
 0xbfe   :  { %3059 = vmatmul.mubr.msk.bf16.vlgmr.msra.gmra.mxu1 %vm441_vm11, %v1800_v6  ;;  %v1794_v6 = vpack.c.bf16 %v1792_v2, %v1792_v2 }
 0xbff   :  { %3069 = vmatpush3.bf16.msra.mxu1 %v1965_v7  ;;  %3070 = vmatprep.mubr.msk.bf16.mxu1 %vm3265_vm12, %v3263_v23  ;;  %v2011_v7 = vsel %vm257_vm0, %v1793_v1, 0 }
 0xc00   :  { %3080 = vmatprep.subr.bf16.mxu1 %v3263_v23  ;;  %v2057_v62 = vsel %vm257_vm0, %v1794_v6, 0  ;;  %vm2595_vm0 = vcmask 162816  }
 0xcb2   :  { %v1717_v48 = vpop.f32.mrf.mxu0 }
 0xcb3   :  { %v1718_v21 = vadd.f32 %v3469_v5, %v1717_v48 }
 0xcb4   :  { %v3042_v8 = vpop.f32.mrf.mxu0 }
 0xcb5   :  { %v1769_v35 = vsel %vm805_vm3, %v1718_v21, -inf }
 0xcb6   :  { %v1720_v9 = vpop.f32.mrf.mxu0  ;;  %v1763_v10 = vpop.f32.mrf.mxu1 }
 0xcb7   :  { %v1764_v32 = vadd.f32 %v3474_v15, %v1763_v10 }
 0xcb8   :  { %v3043_v11 = vpop.f32.mrf.mxu0  ;;  %v3048_v14 = vpop.f32.mrf.mxu1 }
 0xcb9   :  { %v3182_v14 = vld [vmem:[%s3508_s8 + $0x18] sm:$0xff]  }
 0xcba   :  { %v1766_v16 = vpop.f32.mrf.mxu1  ;;  %v1838_v17 = vpop.f32.mrf.mxu0 }
 0xcbb   :  { %v1839_v18 = vadd.f32 %v3469_v5, %v1838_v17  ;;  %v1772_v5 = vsel %vm805_vm3, %v1764_v32, -inf  ;;  %v3183_v16 = vld [vmem:[%s3508_s8 + $0x10] sm:$0xff]   ;;  %s3285_s8 = smov 27  }
 0xcbc   :  { %v3049_v19 = vpop.f32.mrf.mxu1  ;;  %v3054_v20 = vpop.f32.mrf.mxu0 }
 0xcbd   :  { %v1887_v22 = vsel %vm805_vm3, %v1839_v18, -inf }
 0xcbe   :  { %v1881_v24 = vpop.f32.mrf.mxu1  ;;  %1888 = vmax.xlane.f32.xlu1 %v1887_v22  ;;  %v1841_v28 = vpop.f32.mrf.mxu0 }
 0xcbf   :  { %v1882_v29 = vadd.f32 %v3474_v15, %v1881_v24 }
 0xcc0   :  { %v3055_v30 = vpop.f32.mrf.mxu0  ;;  %v3060_v31 = vpop.f32.mrf.mxu1 }
 0xcc1   :  { %v1890_v33 = vsel %vm805_vm3, %v1882_v29, -inf }
 0xcc2   :  { %1891 = vmax.xlane.f32.xlu0 %v1890_v33  ;;  %v1884_v36 = vpop.f32.mrf.mxu1  ;;  %1770 = vmax.xlane.f32.xlu1 %v1769_v35 }
 0xcc4   :  { %v3061_v37 = vpop.f32.mrf.mxu1 }
 0xcc6   :  { %1773 = vmax.xlane.f32.xlu0 %v1772_v5 }
 0xd47   :  { %v1889_v38 = vpop.xlane.xlu1 %1888 }
 0xd48   :  { %v1893_v39 = vsub.f32 %v1839_v18, %v1889_v38 }
 0xd4a   :  { %v1895_v40 = vmul.f32 1.442695, %v1893_v39 }
 0xd4b   :  { %v1892_v41 = vpop.xlane.xlu0 %1891  ;;  %v1771_v42 = vpop.xlane.xlu1 %1770 }
 0xd4c   :  { %3225 = vpow2.f32 %v1895_v40  ;;  %v1894_v43 = vsub.f32 %v1882_v29, %v1892_v41  ;;  %v1775_v44 = vsub.f32 %v1718_v21, %v1771_v42  ;;  %v2731_v40 = vld [vmem:[%s3521_s12 + $0x1] ss:$0 sm:$0xff] }
 0xd4e   :  { %v1897_v15 = vmul.f32 1.442695, %v1894_v43  ;;  %v1777_v46 = vmul.f32 1.442695, %v1775_v44 }
 0xd4f   :  { %v1774_v47 = vpop.xlane.xlu0 %1773 }
 0xd50   :  { %3227 = vpow2.f32 %v1897_v15  ;;  %v1776_v25 = vsub.f32 %v1764_v32, %v1774_v47 }
 0xd51   :  { %3229 = vpow2.f32 %v1777_v46 }
 0xd52   :  { %v1779_v49 = vmul.f32 1.442695, %v1776_v25 }
 0xd54   :  { %3231 = vpow2.f32 %v1779_v49 }
 0xd59   :  { %v3226_v50 = vpop.eup %3225 }
 0xd5a   :  { %v1899_v52 = vsel %vm805_vm3, %v3226_v50, 0.0 }
 0xd5b   :  { %1900 = vadd.xlane.f32.xlu1 %v1899_v52 }
 0xd5d   :  { %v3228_v53 = vpop.eup %3227 }
 0xd5e   :  { %v3230_v54 = vpop.eup %3229  ;;  %v1902_v55 = vsel %vm805_vm3, %v3228_v53, 0.0 }
 0xd5f   :  { %1903 = vadd.xlane.f32.xlu0 %v1902_v55  ;;  %v1781_v12 = vsel %vm805_vm3, %v3230_v54, 0.0 }
 0xd60   :  { %1782 = vadd.xlane.f32.xlu1 %v1781_v12 }
 0xd61   :  { %v3232_v56 = vpop.eup %3231 }
 0xd62   :  { %v1784_v57 = vsel %vm805_vm3, %v3232_v56, 0.0 }
 0xd63   :  { %1785 = vadd.xlane.f32.xlu0 %v1784_v57 }
 0xde4   :  { %v1901_v58 = vpop.xlane.xlu1 %1900 }
 0xde5   :  { %3233 = vrcp.f32 %v1901_v58 }
 0xde8   :  { %v1904_v59 = vpop.xlane.xlu0 %1903 }
 0xde9   :  { %3235 = vrcp.f32 %v1904_v59  ;;  %v1783_v60 = vpop.xlane.xlu1 %1782 }
 0xdea   :  { %3237 = vrcp.f32 %v1783_v60  ;;  %v3184_v60 = vld [vmem:[%s3533_s16 + $0x18] sm:$0xff]  }
 0xdec   :  { %v1786_v61 = vpop.xlane.xlu0 %1785 }
 0xded   :  { %3239 = vrcp.f32 %v1786_v61 }
 0xdf2   :  { %v3234_v0 = vpop.eup %3233 }
 0xdf3   :  { %v1907_v45 = vmul.f32 %v3234_v0, %v3226_v50 }
 0xdf5   :  { %v1913_v3 = vpack.c.bf16 %v1907_v45, %v1907_v45 }
 0xdf6   :  { %v3236_v4 = vpop.eup %3235 }
 0xdf7   :  { %v3238_v51 = vpop.eup %3237  ;;  %3065 = vmatmul.mubr.msk.bf16.vlgmr.msra.gmra.mxu0 %vm805_vm3, %v1913_v3  ;;  %v1908_v48 = vmul.f32 %v3236_v4, %v3228_v53 }
 0xdf8   :  { %3075 = vmatpush3.bf16.msra.mxu0 %v2011_v7  ;;  %3076 = vmatprep.mubr.msk.bf16.mxu0 %vm3265_vm12, %v3263_v23  ;;  %v1789_v8 = vmul.f32 %v3238_v51, %v3230_v54  ;;  %v2737_v51 = vld [vmem:[%s3542_s21 + $0x1] ss:$0 sm:$0xff]  ;;  %s2630_s21 = sld [smem:[%s3762_s0 + %s3285_s8]]  }
 0xdf9   :  { %v1914_v13 = vpack.c.bf16 %v1908_v48, %v1908_v48  ;;  %3086 = vmatprep.subr.bf16.mxu0 %v3263_v23 }
 0xdfa   :  { %v3240_v34 = vpop.eup %3239  ;;  %v1795_v9 = vpack.c.bf16 %v1789_v8, %v1789_v8 }
 0xdfb   :  { %3071 = vmatmul.mubr.msk.bf16.vlgmr.msra.gmra.mxu1 %vm805_vm3, %v1914_v13  ;;  %v1790_v10 = vmul.f32 %v3240_v34, %v3232_v56  ;;  %v2738_v13 = vld [vmem:[%s3547_s26 + $0x1] ss:$0 sm:$0xff]  ;;  %s3286_s26 = smov 26  }
 0xdfc   :  { %3081 = vmatpush3.bf16.msra.mxu1 %v2057_v62  ;;  %3082 = vmatprep.mubr.msk.bf16.mxu1 %vm3265_vm12, %v3263_v23  ;;  %s2629_s1 = sld [smem:[%s3762_s0 + %s3286_s26]]  }
 0xdfd   :  { %3094 = vmatprep.subr.bf16.mxu1 %v3263_v23  ;;  %v1796_v11 = vpack.c.bf16 %v1790_v10, %v1790_v10  ;;  %v3186_v10 = vld [vmem:[%s3560_s2 + $0x38] sm:$0xff]  }
 0xdff   :  { %3077 = vmatmul.mubr.msk.bf16.vlgmr.msra.gmra.mxu0 %vm805_vm3, %v1795_v9 }
 0xe00   :  { %3090 = vmatprep.mubr.msk.bf16.mxu0 %vm3265_vm12, %v3263_v23  ;;  %3087 = vmatpush3.bf16.msra.mxu0 %v3182_v14  ;;  %v3188_v14 = vld [vmem:[%s3560_s2 + $0x28] sm:$0xff]  }
 0xe01   :  { %3088 = vmatprep.subr.bf16.mxu0 %v3263_v23 }
 0xe03   :  { %3083 = vmatmul.mubr.msk.bf16.vlgmr.msra.gmra.mxu1 %vm805_vm3, %v1796_v11  ;;  %v3187_v11 = vld [vmem:[%s3560_s2 + $0x30] sm:$0xff]  }
 0xe04   :  { %3098 = vmatprep.mubr.msk.bf16.mxu1 %vm3265_vm12, %v3263_v23  ;;  %3089 = vmatpush3.bf16.msra.mxu0 %v3183_v16  ;;  %v3189_v16 = vld [vmem:[%s3560_s2 + $0x20] sm:$0xff]   ;;  %s3287_s2 = smov 28  }
 0xe05   :  { %3102 = vmatprep.subr.bf16.mxu0 %v3263_v23  ;;  %3095 = vmatpush3.bf16.msra.mxu1 %v3184_v60  ;;  %s2631_s6 = sld [smem:[%s3762_s0 + %s3287_s2]]  }
 0xe06   :  { %3096 = vmatprep.subr.bf16.mxu1 %v3263_v23 }
 0xeb7   :  { %v1955_v17 = vpop.f32.mrf.mxu0 }
 0xeb9   :  { %v3066_v18 = vpop.f32.mrf.mxu0 }
 0xebb   :  { %v1958_v19 = vpop.f32.mrf.mxu0  ;;  %v2001_v20 = vpop.f32.mrf.mxu1 }
 0xebd   :  { %v3067_v21 = vpop.f32.mrf.mxu0  ;;  %v3072_v22 = vpop.f32.mrf.mxu1 }
 0xebf   :  { %v2004_v24 = vpop.f32.mrf.mxu1  ;;  %v2047_v28 = vpop.f32.mrf.mxu0 }
 0xec0   :  { %v2048_v33 = vadd.f32 %v2047_v28, %v1955_v17  ;;  %v2744_v17 = vld [vmem:[%s3573_s10 + $0x1] ss:$0 sm:$0xff]  ;;  %s3288_s10 = smov 29  }
 0xec1   :  { %v3073_v29 = vpop.f32.mrf.mxu1  ;;  %v3078_v30 = vpop.f32.mrf.mxu0  ;;  %s2632_s14 = sld [smem:[%s3762_s0 + %s3288_s10]]  }
 0xec3   :  { %v2050_v31 = vpop.f32.mrf.mxu0  ;;  %v2093_v32 = vpop.f32.mrf.mxu1 }
 0xec4   :  { %v2094_v35 = vadd.f32 %v2093_v32, %v2001_v20 }
 0xec5   :  { %v3079_v36 = vpop.f32.mrf.mxu0  ;;  %v3084_v37 = vpop.f32.mrf.mxu1 }
 0xec6   :  { %v2099_v5 = vpack.c.bf16 %v2094_v35, %v2048_v33 }
 0xec7   :  { %v2096_v38 = vpop.f32.mrf.mxu1 }
 0xec8   :  { %3091 = vmatmul.mubr.msk.bf16.vlgmr.msra.gmra.mxu0 %vm441_vm11, %v2099_v5 }
 0xec9   :  { %v3085_v39 = vpop.f32.mrf.mxu1  ;;  %3110 = vmatprep.mubr.msk.bf16.mxu0 %vm3265_vm12, %v3263_v23  ;;  %3103 = vmatpush3.bf16.msra.mxu0 %v3186_v10 }
 0xeca   :  { %3104 = vmatprep.subr.bf16.mxu0 %v3263_v23 }
 0xecd   :  { %3105 = vmatpush3.bf16.msra.mxu0 %v3187_v11 }
 0xece   :  { %3106 = vmatprep.subr.bf16.mxu0 %v3263_v23 }
 0xed1   :  { %3107 = vmatpush3.bf16.msra.mxu0 %v3188_v14  ;;  %v2766_v14 = vld [vmem:[%s3606_s25 + $0x1] ss:$0 sm:$0xff] }
 0xed2   :  { %3108 = vmatprep.subr.bf16.mxu0 %v3263_v23 }
 0xed5   :  { %3109 = vmatpush3.bf16.msra.mxu0 %v3189_v16 }
 0xf88   :  { %v2162_v41 = vpop.f32.mrf.mxu0 }
 0xf89   :  { %v2163_v42 = vadd.f32 %v2731_v40, %v2162_v41 }
 0xf8a   :  { %v3092_v43 = vpop.f32.mrf.mxu0 }
 0xf8b   :  { %v2169_v44 = vadd.f32 %v2163_v42, %v3610_v26 }
 0xf8c   :  { %v2165_v15 = vpop.f32.mrf.mxu0 }
 0xf8d   :  { %v2166_v46 = vadd.f32 %v2731_v40, %v2165_v15  ;;  %v2175_v47 = vsel %vm441_vm11, %v2169_v44, 0.0 }
 0xf8e   :  { %2176 = vadd.xlane.f32.xlu1 %v2175_v47  ;;  %v3093_v25 = vpop.f32.mrf.mxu0  ;;  %v2757_v47 = vld [vmem:[%s3582_s15 + $0x1] ss:$0 sm:$0xff] }
 0xf8f   :  { %v2170_v49 = vadd.f32 %v2166_v46, %v3612_v27  ;;  %v3185_v27 = vld [vmem:[%s3533_s16 + $0x10] sm:$0xff]  }
 0xf90   :  { %3097 = vmatpush3.bf16.msra.mxu1 %v3185_v27 }
 0xf91   :  { %v2178_v50 = vsel %vm441_vm11, %v2170_v49, 0.0  ;;  %3114 = vmatprep.subr.bf16.mxu1 %v3263_v23 }
 0xf92   :  { %2179 = vadd.xlane.f32.xlu0 %v2178_v50 }
0x1017   :  { %v2177_v52 = vpop.xlane.xlu1 %2176 }
0x1018   :  { %v2181_v53 = vmul.f32 0.03125, %v2177_v52 }
0x101a   :  { %v2183_v54 = vsub.f32 %v2169_v44, %v2181_v53 }
0x101b   :  { %v2180_v55 = vpop.xlane.xlu0 %2179 }
0x101c   :  { %v2182_v12 = vmul.f32 0.03125, %v2180_v55  ;;  %v2185_v56 = vmul.f32 %v2183_v54, %v2183_v54 }
0x101e   :  { %v2184_v26 = vsub.f32 %v2170_v49, %v2182_v12  ;;  %v2187_v57 = vsel %vm441_vm11, %v2185_v56, 0.0 }
0x101f   :  { %2188 = vadd.xlane.f32.xlu1 %v2187_v57 }
0x1020   :  { %v2186_v58 = vmul.f32 %v2184_v26, %v2184_v26 }
0x1022   :  { %v2190_v59 = vsel %vm441_vm11, %v2186_v58, 0.0 }
0x1023   :  { %2191 = vadd.xlane.f32.xlu0 %v2190_v59 }
0x10a8   :  { %v2189_v61 = vpop.xlane.xlu1 %2188 }
0x10a9   :  { %v2193_v63 = vmul.f32 0.03125, %v2189_v61 }
0x10ab   :  { %v2195_v0 = vadd.f32 1e-12, %v2193_v63 }
0x10ac   :  { %v2192_v1 = vpop.xlane.xlu0 %2191 }
0x10ad   :  { %3241 = vrsqrt.f32 %v2195_v0  ;;  %v2194_v2 = vmul.f32 0.03125, %v2192_v1 }
0x10af   :  { %v2196_v45 = vadd.f32 1e-12, %v2194_v2 }
0x10b1   :  { %3243 = vrsqrt.f32 %v2196_v45  ;;  %v3190_v45 = vld [vmem:[%s2628_s27 + $0x8] sm:$0xff]  }
0x10ba   :  { %v3242_v3 = vpop.eup %3241 }
0x10bb   :  { %v2199_v4 = vmul.f32 %v3242_v3, %v2183_v54  ;;  %v3191_v3 = vld [vmem:[%s2628_s27] sm:$0xff]  }
0x10bd   :  { %v2207_v48 = vmul.f32 %v2737_v51, %v2199_v4 }
0x10be   :  { %v3244_v6 = vpop.eup %3243 }
0x10bf   :  { %v2200_v7 = vmul.f32 %v3244_v6, %v2184_v26  ;;  %v2215_v34 = vadd.f32 %v2738_v13, %v2207_v48 }
0x10c1   :  { %v2208_v8 = vmul.f32 %v2737_v51, %v2200_v7 }
0x10c3   :  { %v2216_v62 = vadd.f32 %v2738_v13, %v2208_v8 }
0x10c5   :  { %v2217_v9 = vpack.c.bf16 %v2216_v62, %v2215_v34 }
0x10c7   :  { %3099 = vmatmul.mubr.msk.bf16.vlgmr.msra.gmra.mxu1 %vm441_vm11, %v2217_v9 }
0x10c8   :  { %3118 = vmatprep.mubr.msk.bf16.mxu1 %vm3265_vm12, %v3263_v23  ;;  %3115 = vmatpush3.bf16.msra.mxu1 %v3190_v45 }
0x10c9   :  { %3116 = vmatprep.subr.bf16.mxu1 %v3263_v23 }
0x10cc   :  { %3117 = vmatpush3.bf16.msra.mxu1 %v3191_v3 }
0x10cd   :  { %3122 = vmatprep.subr.bf16.mxu1 %v3263_v23 }
0x1187   :  { %v2280_v18 = vpop.f32.mrf.mxu1 }
0x1188   :  { %v2281_v19 = vadd.f32 %v2744_v17, %v2280_v18 }
0x1189   :  { %v3100_v20 = vpop.f32.mrf.mxu1 }
0x118a   :  { %v2289_v21 = vmul.f32 0.044715, %v2281_v19  ;;  %v2287_v41 = vmul.f32 0.5, %v2281_v19  ;;  %v3192_v20 = vld [vmem:[%s2630_s21] sm:$0xff]  }
0x118b   :  { %v2283_v22 = vpop.f32.mrf.mxu1 }
0x118c   :  { %v2291_v24 = vmul.f32 %v2289_v21, %v2281_v19  ;;  %v2284_v28 = vadd.f32 %v2744_v17, %v2283_v22  ;;  %v2767_v21 = vld [vmem:[%s2629_s1] ss:$0 sm:$0xff] }
0x118d   :  { %v3101_v29 = vpop.f32.mrf.mxu1 }
0x118e   :  { %v2293_v30 = vmul.f32 %v2291_v24, %v2281_v19  ;;  %v2290_v31 = vmul.f32 0.044715, %v2284_v28  ;;  %v2288_v42 = vmul.f32 0.5, %v2284_v28 }
0x1190   :  { %v2295_v32 = vadd.f32 %v2293_v30, %v2281_v19  ;;  %v2292_v33 = vmul.f32 %v2290_v31, %v2284_v28 }
0x1192   :  { %v2297_v35 = vmul.f32 0.7978846, %v2295_v32  ;;  %v2294_v36 = vmul.f32 %v2292_v33, %v2284_v28 }
0x1194   :  { %3245 = vtanh.f32 %v2297_v35  ;;  %v2296_v37 = vadd.f32 %v2294_v36, %v2284_v28 }
0x1196   :  { %v2298_v5 = vmul.f32 0.7978846, %v2296_v37 }
0x1198   :  { %3247 = vtanh.f32 %v2298_v5 }
0x11a1   :  { %v3246_v38 = vpop.eup %3245 }
0x11a2   :  { %v2301_v39 = vadd.f32 1.0, %v3246_v38 }
0x11a4   :  { %v2303_v44 = vmul.f32 %v2301_v39, %v2287_v41 }
0x11a5   :  { %v3248_v40 = vpop.eup %3247 }
0x11a6   :  { %v2302_v43 = vadd.f32 1.0, %v3248_v40 }
0x11a8   :  { %v2304_v15 = vmul.f32 %v2302_v43, %v2288_v42 }
0x11aa   :  { %v2305_v46 = vpack.c.bf16 %v2304_v15, %v2303_v44 }
0x11ac   :  { %3111 = vmatmul.mubr.msk.bf16.vlgmr.msra.gmra.mxu0 %vm1376_vm4, %v2305_v46 }
0x126c   :  { %v2384_v25 = vpop.f32.mrf.mxu0 }
0x126d   :  { %v2385_v49 = vadd.f32 %v2757_v47, %v2384_v25 }
0x126e   :  { %v3112_v50 = vpop.f32.mrf.mxu0 }
0x126f   :  { %v2391_v52 = vadd.f32 %v2385_v49, %v2215_v34  ;;  %v2771_v50 = vld [vmem:[%s2631_s6] ss:$0 sm:$0xff] }
0x1270   :  { %v2387_v53 = vpop.f32.mrf.mxu0 }
0x1271   :  { %v2388_v54 = vadd.f32 %v2757_v47, %v2387_v53  ;;  %v2397_v55 = vsel %vm441_vm11, %v2391_v52, 0.0 }
0x1272   :  { %2398 = vadd.xlane.f32.xlu1 %v2397_v55  ;;  %v3113_v12 = vpop.f32.mrf.mxu0 }
0x1273   :  { %v2392_v56 = vadd.f32 %v2388_v54, %v2216_v62  ;;  %v2765_v62 = vld [vmem:[%s3601_s18 + $0x1] ss:$0 sm:$0xff] }
0x1275   :  { %v2400_v26 = vsel %vm441_vm11, %v2392_v56, 0.0 }
0x1276   :  { %2401 = vadd.xlane.f32.xlu0 %v2400_v26 }
0x12fb   :  { %v2399_v57 = vpop.xlane.xlu1 %2398 }
0x12fc   :  { %v2403_v58 = vmul.f32 0.03125, %v2399_v57 }
0x12fe   :  { %v2405_v59 = vsub.f32 %v2391_v52, %v2403_v58 }
0x12ff   :  { %v2402_v60 = vpop.xlane.xlu0 %2401 }
0x1300   :  { %v2404_v27 = vmul.f32 0.03125, %v2402_v60  ;;  %v2407_v61 = vmul.f32 %v2405_v59, %v2405_v59 }
0x1302   :  { %v2406_v63 = vsub.f32 %v2392_v56, %v2404_v27  ;;  %v2409_v0 = vsel %vm441_vm11, %v2407_v61, 0.0 }
0x1303   :  { %2410 = vadd.xlane.f32.xlu1 %v2409_v0 }
0x1304   :  { %v2408_v1 = vmul.f32 %v2406_v63, %v2406_v63 }
0x1306   :  { %v2412_v2 = vsel %vm441_vm11, %v2408_v1, 0.0 }
0x1307   :  { %2413 = vadd.xlane.f32.xlu0 %v2412_v2 }
0x138c   :  { %v2411_v4 = vpop.xlane.xlu1 %2410 }
0x138d   :  { %v2415_v51 = vmul.f32 0.03125, %v2411_v4 }
0x138f   :  { %v2417_v6 = vadd.f32 1e-12, %v2415_v51 }
0x1390   :  { %v2414_v7 = vpop.xlane.xlu0 %2413 }
0x1391   :  { %3249 = vrsqrt.f32 %v2417_v6  ;;  %v2416_v48 = vmul.f32 0.03125, %v2414_v7 }
0x1393   :  { %v2418_v13 = vadd.f32 1e-12, %v2416_v48 }
0x1395   :  { %3251 = vrsqrt.f32 %v2418_v13 }
0x139e   :  { %v3250_v8 = vpop.eup %3249 }
0x139f   :  { %v2421_v34 = vmul.f32 %v3250_v8, %v2405_v59 }
0x13a1   :  { %v2429_v11 = vmul.f32 %v2765_v62, %v2421_v34 }
0x13a2   :  { %v3252_v9 = vpop.eup %3251 }
0x13a3   :  { %v2422_v10 = vmul.f32 %v3252_v9, %v2406_v63  ;;  %v2437_v17 = vadd.f32 %v2766_v14, %v2429_v11 }
0x13a5   :  { %v2430_v16 = vmul.f32 %v2765_v62, %v2422_v10 }
0x13a7   :  { %v2438_v18 = vadd.f32 %v2766_v14, %v2430_v16 }
0x13a9   :  { %v2439_v19 = vpack.c.bf16 %v2438_v18, %v2437_v17 }
0x13ab   :  { %3119 = vmatmul.mubr.msk.bf16.vlgmr.msra.gmra.mxu1 %vm441_vm11, %v2439_v19 }
0x13ac   :  { %3124 = vmatprep.mubr.msk.bf16.mxu1 %vm3265_vm12, %v3263_v23  ;;  %3123 = vmatpush3.bf16.msra.mxu1 %v3192_v20 }
0x146b   :  { %v2500_v22 = vpop.f32.mrf.mxu1 }
0x146c   :  { %v2501_v24 = vadd.f32 %v2767_v21, %v2500_v22 }
0x146d   :  { %v3120_v28 = vpop.f32.mrf.mxu1 }
0x146e   :  { %v2509_v29 = vmul.f32 0.044715, %v2501_v24  ;;  %v2507_v44 = vmul.f32 0.5, %v2501_v24 }
0x146f   :  { %v2503_v30 = vpop.f32.mrf.mxu1 }
0x1470   :  { %v2511_v31 = vmul.f32 %v2509_v29, %v2501_v24  ;;  %v2504_v23 = vadd.f32 %v2767_v21, %v2503_v30 }
0x1471   :  { %v3121_v32 = vpop.f32.mrf.mxu1 }
0x1472   :  { %v2513_v33 = vmul.f32 %v2511_v31, %v2501_v24  ;;  %v2510_v35 = vmul.f32 0.044715, %v2504_v23  ;;  %v2508_v15 = vmul.f32 0.5, %v2504_v23 }
0x1474   :  { %v2515_v36 = vadd.f32 %v2513_v33, %v2501_v24  ;;  %v2512_v37 = vmul.f32 %v2510_v35, %v2504_v23 }
0x1476   :  { %v2517_v5 = vmul.f32 0.7978846, %v2515_v36  ;;  %v2514_v38 = vmul.f32 %v2512_v37, %v2504_v23 }
0x1478   :  { %3253 = vtanh.f32 %v2517_v5  ;;  %v2516_v39 = vadd.f32 %v2514_v38, %v2504_v23 }
0x147a   :  { %v2518_v40 = vmul.f32 0.7978846, %v2516_v39 }
0x147c   :  { %3255 = vtanh.f32 %v2518_v40 }
0x1485   :  { %v3254_v41 = vpop.eup %3253 }
0x1486   :  { %v2521_v42 = vadd.f32 1.0, %v3254_v41 }
0x1488   :  { %v2523_v47 = vmul.f32 %v2521_v42, %v2507_v44 }
0x1489   :  { %v3256_v43 = vpop.eup %3255 }
0x148a   :  { %v2522_v46 = vadd.f32 1.0, %v3256_v43 }
0x148c   :  { %v2524_v25 = vmul.f32 %v2522_v46, %v2508_v15 }
0x148e   :  { %v2525_v49 = vpack.c.bf16 %v2524_v25, %v2523_v47 }
0x1490   :  { %3125 = vmatmul.mubr.msk.bf16.vlgmr.msra.gmra.mxu1 %vm168_vm2, %v2525_v49 }
0x1550   :  { %v2578_v52 = vpop.f32.mrf.mxu1 }
0x1551   :  { %v2579_v53 = vadd.f32 %v2771_v50, %v2578_v52 }
0x1552   :  { %v3126_v54 = vpop.f32.mrf.mxu1 }
0x1553   :  { %2587 = vrot.lane.b32.xlu1 %v2579_v53, %s3275_s9 }
0x1554   :  { %v2581_v55 = vpop.f32.mrf.mxu1 }
0x1555   :  { %v2582_v12 = vadd.f32 %v2771_v50, %v2581_v55 }
0x1556   :  { %v3127_v56 = vpop.f32.mrf.mxu1 }
0x1557   :  { %2589 = vrot.lane.b32.xlu0 %v2582_v12, %s3275_s9 }
0x15c5   :  { %v2588_v26 = vpop.permute.xlu1 %2587 }
0x15c6   :  { %v2593_v57 = vsel %vm168_vm2, %v2523_v47, %v2588_v26 }
0x15c7   :  { %v2596_v58 = vsel %vm2595_vm0, %v2593_v57, 0.0 }
0x15c8   :  { %2598 = vst [vmem:[%s2632_s14] sm:$0xff] %v2596_v58 }
0x15c9   :  { %v2590_v59 = vpop.permute.xlu0 %2589 }
0x15ca   :  { %v2594_v60 = vsel %vm168_vm2, %v2524_v25, %v2590_v59 }
0x15cb   :  { %v2597_v27 = vsel %vm2595_vm0, %v2594_v60, 0.0 }
0x15cc   :  { %2599 = vst [vmem:[%s2632_s14 + $0x8] sm:$0xff] %v2597_v27 }

</bundles_post_ra>
